<compile_context>
chip_gen: v6e
topology: v6e:2x2x1
jax: 0.10.0
libtpu: 0.0.40
codegen_flags: <defaults>
</compile_context>

<pallas_src>
import functools

import numpy as np
import jax
import jax.numpy as jnp
from jax.experimental import pallas as pl
from jax.experimental.pallas import tpu as pltpu

EPS = 1e-3  # matches nn.BatchNorm2d(out_channels, eps=0.001)


# ------------------------------ Pallas kernel -------------------------------

def _conv_bn_relu_kernel(x_ref, w_ref, s_ref, b_ref, o_ref, *,
                         kh, kw, th, wo, cout):
    """Fused conv (stride 1) + folded BN + ReLU for one (batch, row-tile).

    x_ref : (1, Hp, Wp, Cin)  bf16, padded image (resident across row tiles)
    w_ref : (kh*kw, Cin, Cout) bf16
    s_ref : (1, Cout) f32   folded BN scale
    b_ref : (1, Cout) f32   folded BN bias
    o_ref : (1, th, wo, Cout) f32
    """
    t = pl.program_id(1)           # row-tile index
    r0 = t * th                    # first output row of this tile
    m = th * wo

    acc = jnp.zeros((m, cout), jnp.float32)
    # Tap reduction entirely in VMEM: no HBM im2col, bf16 MXU, f32 accumulate.
    for i in range(kh):
        for j in range(kw):
            patch = x_ref[0, pl.ds(r0 + i, th), pl.ds(j, wo), :]   # (th, wo, Cin)
            patch = patch.reshape(m, patch.shape[-1])              # (th*wo, Cin)
            acc = acc + jnp.dot(patch, w_ref[i * kw + j],
                                preferred_element_type=jnp.float32)

    # Fused BN + ReLU epilogue (f32 on the VPU).
    y = acc * s_ref[0, :] + b_ref[0, :]
    y = jnp.maximum(y, 0.0)
    o_ref[0] = y.reshape(th, wo, cout).astype(o_ref.dtype)


def _pick_row_tile(ho, wo, target_rows):
    """Largest divisor of `ho` whose tile has at most ~target_rows matmul rows."""
    best = 1
    for t in range(1, ho + 1):
        if ho % t == 0 and t * wo <= target_rows:
            best = t
    return best


# ------------------------------ public wrapper ------------------------------

def basic_conv2d_forward(params, x_nchw, *, row_tile_rows=1024):
    """BasicConv2d forward.  x_nchw: (N, Cin, H, W) f32 -> (N, Cout, Ho, Wo) f32."""
    w = params["w"]                              # (kh, kw, Cin, Cout) f32
    kh, kw, cin, cout = w.shape
    p = kh // 2                                  # PyTorch: padding = kernel_size // 2

    x = jnp.transpose(x_nchw, (0, 2, 3, 1)).astype(jnp.float32)   # NHWC
    n, h, wd, _ = x.shape
    xp = jnp.pad(x, ((0, 0), (p, p), (p, p), (0, 0))).astype(jnp.bfloat16)
    hp, wp = h + 2 * p, wd + 2 * p
    ho, wo = hp - kh + 1, wp - kw + 1

    th = _pick_row_tile(ho, wo, row_tile_rows)

    w_flat = w.reshape(kh * kw, cin, cout).astype(jnp.bfloat16)
    scale = params["scale"].reshape(1, cout).astype(jnp.float32)
    bias = params["bias"].reshape(1, cout).astype(jnp.float32)

    kernel = functools.partial(_conv_bn_relu_kernel,
                               kh=kh, kw=kw, th=th, wo=wo, cout=cout)

    flops = 2 * n * ho * wo * kh * kw * cin * cout
    bytes_accessed = (n * hp * wp * cin * 2 +            # bf16 padded input
                      kh * kw * cin * cout * 2 +         # bf16 weights
                      n * ho * wo * cout * 4)            # f32 output

    out = pl.pallas_call(
        kernel,
        grid=(n, ho // th),
        in_specs=[
            # Whole padded image per batch element; constant along the row-tile
            # axis so it stays resident in VMEM (fetched once per batch index).
            pl.BlockSpec((1, hp, wp, cin), lambda b, t: (b, 0, 0, 0)),
            pl.BlockSpec((kh * kw, cin, cout), lambda b, t: (0, 0, 0)),
            pl.BlockSpec((1, cout), lambda b, t: (0, 0)),
            pl.BlockSpec((1, cout), lambda b, t: (0, 0)),
        ],
        out_specs=pl.BlockSpec((1, th, wo, cout), lambda b, t: (b, t, 0, 0)),
        out_shape=jax.ShapeDtypeStruct((n, ho, wo, cout), jnp.float32),
        compiler_params=pltpu.CompilerParams(
            dimension_semantics=("parallel", "parallel")),
        cost_estimate=pl.CostEstimate(flops=flops, transcendentals=0,
                                      bytes_accessed=bytes_accessed),
    )(xp, w_flat, scale, bias)

    return jnp.transpose(out, (0, 3, 1, 2))     # back to NCHW


# ------------------------------- parameters ---------------------------------

def make_params(key, in_channels, out_channels, kernel_size):
    kconv, kbn = jax.random.split(key)
    w = 0.2 * jax.random.normal(
        kconv, (kernel_size, kernel_size, in_channels, out_channels), jnp.float32)
    k1, k2, k3, k4 = jax.random.split(kbn, 4)
    gamma = 1.0 + 0.1 * jax.random.normal(k1, (out_channels,), jnp.float32)
    beta = 0.1 * jax.random.normal(k2, (out_channels,), jnp.float32)
    mean = 0.1 * jax.random.normal(k3, (out_channels,), jnp.float32)
    var = 1.0 + 0.1 * jax.random.uniform(k4, (out_channels,), jnp.float32)
    scale = gamma / jnp.sqrt(var + EPS)      # folded inference BN
    bias = beta - mean * scale
    return {"w": w, "scale": scale, "bias": bias}


# ---------------------------- pure-JAX reference ----------------------------

def basic_conv2d_reference(params, x_nchw):
    w = params["w"]
    kh = w.shape[0]
    p = kh // 2
    x = jnp.transpose(x_nchw, (0, 2, 3, 1)).astype(jnp.float32)
    y = jax.lax.conv_general_dilated(
        x.astype(jnp.bfloat16), w.astype(jnp.bfloat16),
        window_strides=(1, 1),
        padding=[(p, p), (p, p)],
        dimension_numbers=("NHWC", "HWIO", "NHWC"),
        preferred_element_type=jnp.float32)
    y = y * params["scale"] + params["bias"]
    y = jnp.maximum(y, 0.0)
    return jnp.transpose(y, (0, 3, 1, 2))


# ----------------------------------- main ------------------------------------

if __name__ == "__main__":
    N, Cin, H, W = 2, 4, 16, 16
    Cout, K = 32, 3

    key = jax.random.PRNGKey(0)
    kx, kp = jax.random.split(key)
    x = jax.random.normal(kx, (N, Cin, H, W), jnp.float32)
    params = make_params(kp, Cin, Cout, K)

    # row_tile_rows=128 -> two row tiles at this size, exercising the tiled grid.
    out = basic_conv2d_forward(params, x, row_tile_rows=128)
    out = jax.block_until_ready(out)

    ref = basic_conv2d_reference(params, x)
    ref = jax.block_until_ready(ref)

    assert out.shape == (N, Cout, H, W), out.shape
    np.testing.assert_allclose(np.asarray(out), np.asarray(ref),
                               rtol=1e-2, atol=1e-2)
    print("KERNEL_OK")
</pallas_src>

<mosaic_0001>
module attributes {stable_mosaic.version = 11 : i64} {
  func.func @_conv_bn_relu_kernel(%arg0: i32, %arg1: i32, %arg2: memref<1x18x18x4xbf16, #tpu.memory_space<vmem>>, %arg3: memref<9x4x32xbf16, #tpu.memory_space<vmem>>, %arg4: memref<1x32xf32, #tpu.memory_space<vmem>>, %arg5: memref<1x32xf32, #tpu.memory_space<vmem>>, %arg6: memref<1x8x16x32xf32, #tpu.memory_space<vmem>>) attributes {dimension_semantics = [#tpu.dimension_semantics<parallel>, #tpu.dimension_semantics<parallel>], iteration_bounds = array<i64: 2, 2>, scalar_prefetch = 0 : i64, scratch_operands = 0 : i64, tpu.core_type = #tpu.core_type<tc>, window_params = [{transform_indices = @transform_0, window_bounds = array<i64: 1, 18, 18, 4>}, {pipeline_mode = #tpu.pipeline_mode<synchronous>, transform_indices = @transform_1, window_bounds = array<i64: 9, 4, 32>}, {pipeline_mode = #tpu.pipeline_mode<synchronous>, transform_indices = @transform_2, window_bounds = array<i64: 1, 32>}, {pipeline_mode = #tpu.pipeline_mode<synchronous>, transform_indices = @transform_3, window_bounds = array<i64: 1, 32>}, {transform_indices = @transform_4, window_bounds = array<i64: 1, 8, 16, 32>}]} {
    %c8_i32 = arith.constant 8 : i32
    %0 = arith.muli %arg1, %c8_i32 : i32
    %cst = arith.constant 0.000000e+00 : f32
    %1 = vector.broadcast %cst : f32 to vector<128x32xf32>
    %c0_i32 = arith.constant 0 : i32
    %2 = arith.addi %0, %c0_i32 : i32
    %c0 = arith.constant 0 : index
    %3 = arith.index_cast %2 : i32 to index
    %c0_0 = arith.constant 0 : index
    %c0_1 = arith.constant 0 : index
    %4 = vector.load %arg2[%c0, %3, %c0_0, %c0_1] : memref<1x18x18x4xbf16, #tpu.memory_space<vmem>>, vector<1x8x16x4xbf16>
    %5 = vector.shape_cast %4 : vector<1x8x16x4xbf16> to vector<8x16x4xbf16>
    %6 = vector.shape_cast %5 : vector<8x16x4xbf16> to vector<128x4xbf16>
    %c0_2 = arith.constant 0 : index
    %c0_3 = arith.constant 0 : index
    %c0_4 = arith.constant 0 : index
    %7 = vector.load %arg3[%c0_2, %c0_3, %c0_4] : memref<9x4x32xbf16, #tpu.memory_space<vmem>>, vector<1x4x32xbf16>
    %8 = vector.shape_cast %7 : vector<1x4x32xbf16> to vector<4x32xbf16>
    %cst_5 = arith.constant dense<0.000000e+00> : vector<128x32xf32>
    %9 = tpu.matmul %6, %8, %cst_5 {dimension_numbers = #tpu.dot_dimension_numbers<[1], [0], [0], [1], [0, 0, 1, 1], [], []>} : vector<128x4xbf16>, vector<4x32xbf16>, vector<128x32xf32> -> vector<128x32xf32>
    %10 = arith.addf %1, %9 : vector<128x32xf32>
    %c0_i32_6 = arith.constant 0 : i32
    %11 = arith.addi %0, %c0_i32_6 : i32
    %c0_7 = arith.constant 0 : index
    %12 = arith.index_cast %11 : i32 to index
    %c1 = arith.constant 1 : index
    %c0_8 = arith.constant 0 : index
    %13 = vector.load %arg2[%c0_7, %12, %c1, %c0_8] : memref<1x18x18x4xbf16, #tpu.memory_space<vmem>>, vector<1x8x16x4xbf16>
    %14 = vector.shape_cast %13 : vector<1x8x16x4xbf16> to vector<8x16x4xbf16>
    %15 = vector.shape_cast %14 : vector<8x16x4xbf16> to vector<128x4xbf16>
    %c1_9 = arith.constant 1 : index
    %c0_10 = arith.constant 0 : index
    %c0_11 = arith.constant 0 : index
    %16 = vector.load %arg3[%c1_9, %c0_10, %c0_11] : memref<9x4x32xbf16, #tpu.memory_space<vmem>>, vector<1x4x32xbf16>
    %17 = vector.shape_cast %16 : vector<1x4x32xbf16> to vector<4x32xbf16>
    %cst_12 = arith.constant dense<0.000000e+00> : vector<128x32xf32>
    %18 = tpu.matmul %15, %17, %cst_12 {dimension_numbers = #tpu.dot_dimension_numbers<[1], [0], [0], [1], [0, 0, 1, 1], [], []>} : vector<128x4xbf16>, vector<4x32xbf16>, vector<128x32xf32> -> vector<128x32xf32>
    %19 = arith.addf %10, %18 : vector<128x32xf32>
    %c0_i32_13 = arith.constant 0 : i32
    %20 = arith.addi %0, %c0_i32_13 : i32
    %c0_14 = arith.constant 0 : index
    %21 = arith.index_cast %20 : i32 to index
    %c2 = arith.constant 2 : index
    %c0_15 = arith.constant 0 : index
    %22 = vector.load %arg2[%c0_14, %21, %c2, %c0_15] : memref<1x18x18x4xbf16, #tpu.memory_space<vmem>>, vector<1x8x16x4xbf16>
    %23 = vector.shape_cast %22 : vector<1x8x16x4xbf16> to vector<8x16x4xbf16>
    %24 = vector.shape_cast %23 : vector<8x16x4xbf16> to vector<128x4xbf16>
    %c2_16 = arith.constant 2 : index
    %c0_17 = arith.constant 0 : index
    %c0_18 = arith.constant 0 : index
    %25 = vector.load %arg3[%c2_16, %c0_17, %c0_18] : memref<9x4x32xbf16, #tpu.memory_space<vmem>>, vector<1x4x32xbf16>
    %26 = vector.shape_cast %25 : vector<1x4x32xbf16> to vector<4x32xbf16>
    %cst_19 = arith.constant dense<0.000000e+00> : vector<128x32xf32>
    %27 = tpu.matmul %24, %26, %cst_19 {dimension_numbers = #tpu.dot_dimension_numbers<[1], [0], [0], [1], [0, 0, 1, 1], [], []>} : vector<128x4xbf16>, vector<4x32xbf16>, vector<128x32xf32> -> vector<128x32xf32>
    %28 = arith.addf %19, %27 : vector<128x32xf32>
    %c1_i32 = arith.constant 1 : i32
    %29 = arith.addi %0, %c1_i32 : i32
    %c0_20 = arith.constant 0 : index
    %30 = arith.index_cast %29 : i32 to index
    %c0_21 = arith.constant 0 : index
    %c0_22 = arith.constant 0 : index
    %31 = vector.load %arg2[%c0_20, %30, %c0_21, %c0_22] : memref<1x18x18x4xbf16, #tpu.memory_space<vmem>>, vector<1x8x16x4xbf16>
    %32 = vector.shape_cast %31 : vector<1x8x16x4xbf16> to vector<8x16x4xbf16>
    %33 = vector.shape_cast %32 : vector<8x16x4xbf16> to vector<128x4xbf16>
    %c3 = arith.constant 3 : index
    %c0_23 = arith.constant 0 : index
    %c0_24 = arith.constant 0 : index
    %34 = vector.load %arg3[%c3, %c0_23, %c0_24] : memref<9x4x32xbf16, #tpu.memory_space<vmem>>, vector<1x4x32xbf16>
    %35 = vector.shape_cast %34 : vector<1x4x32xbf16> to vector<4x32xbf16>
    %cst_25 = arith.constant dense<0.000000e+00> : vector<128x32xf32>
    %36 = tpu.matmul %33, %35, %cst_25 {dimension_numbers = #tpu.dot_dimension_numbers<[1], [0], [0], [1], [0, 0, 1, 1], [], []>} : vector<128x4xbf16>, vector<4x32xbf16>, vector<128x32xf32> -> vector<128x32xf32>
    %37 = arith.addf %28, %36 : vector<128x32xf32>
    %c1_i32_26 = arith.constant 1 : i32
    %38 = arith.addi %0, %c1_i32_26 : i32
    %c0_27 = arith.constant 0 : index
    %39 = arith.index_cast %38 : i32 to index
    %c1_28 = arith.constant 1 : index
    %c0_29 = arith.constant 0 : index
    %40 = vector.load %arg2[%c0_27, %39, %c1_28, %c0_29] : memref<1x18x18x4xbf16, #tpu.memory_space<vmem>>, vector<1x8x16x4xbf16>
    %41 = vector.shape_cast %40 : vector<1x8x16x4xbf16> to vector<8x16x4xbf16>
    %42 = vector.shape_cast %41 : vector<8x16x4xbf16> to vector<128x4xbf16>
    %c4 = arith.constant 4 : index
    %c0_30 = arith.constant 0 : index
    %c0_31 = arith.constant 0 : index
    %43 = vector.load %arg3[%c4, %c0_30, %c0_31] : memref<9x4x32xbf16, #tpu.memory_space<vmem>>, vector<1x4x32xbf16>
    %44 = vector.shape_cast %43 : vector<1x4x32xbf16> to vector<4x32xbf16>
    %cst_32 = arith.constant dense<0.000000e+00> : vector<128x32xf32>
    %45 = tpu.matmul %42, %44, %cst_32 {dimension_numbers = #tpu.dot_dimension_numbers<[1], [0], [0], [1], [0, 0, 1, 1], [], []>} : vector<128x4xbf16>, vector<4x32xbf16>, vector<128x32xf32> -> vector<128x32xf32>
    %46 = arith.addf %37, %45 : vector<128x32xf32>
    %c1_i32_33 = arith.constant 1 : i32
    %47 = arith.addi %0, %c1_i32_33 : i32
    %c0_34 = arith.constant 0 : index
    %48 = arith.index_cast %47 : i32 to index
    %c2_35 = arith.constant 2 : index
    %c0_36 = arith.constant 0 : index
    %49 = vector.load %arg2[%c0_34, %48, %c2_35, %c0_36] : memref<1x18x18x4xbf16, #tpu.memory_space<vmem>>, vector<1x8x16x4xbf16>
    %50 = vector.shape_cast %49 : vector<1x8x16x4xbf16> to vector<8x16x4xbf16>
    %51 = vector.shape_cast %50 : vector<8x16x4xbf16> to vector<128x4xbf16>
    %c5 = arith.constant 5 : index
    %c0_37 = arith.constant 0 : index
    %c0_38 = arith.constant 0 : index
    %52 = vector.load %arg3[%c5, %c0_37, %c0_38] : memref<9x4x32xbf16, #tpu.memory_space<vmem>>, vector<1x4x32xbf16>
    %53 = vector.shape_cast %52 : vector<1x4x32xbf16> to vector<4x32xbf16>
    %cst_39 = arith.constant dense<0.000000e+00> : vector<128x32xf32>
    %54 = tpu.matmul %51, %53, %cst_39 {dimension_numbers = #tpu.dot_dimension_numbers<[1], [0], [0], [1], [0, 0, 1, 1], [], []>} : vector<128x4xbf16>, vector<4x32xbf16>, vector<128x32xf32> -> vector<128x32xf32>
    %55 = arith.addf %46, %54 : vector<128x32xf32>
    %c2_i32 = arith.constant 2 : i32
    %56 = arith.addi %0, %c2_i32 : i32
    %c0_40 = arith.constant 0 : index
    %57 = arith.index_cast %56 : i32 to index
    %c0_41 = arith.constant 0 : index
    %c0_42 = arith.constant 0 : index
    %58 = vector.load %arg2[%c0_40, %57, %c0_41, %c0_42] : memref<1x18x18x4xbf16, #tpu.memory_space<vmem>>, vector<1x8x16x4xbf16>
    %59 = vector.shape_cast %58 : vector<1x8x16x4xbf16> to vector<8x16x4xbf16>
    %60 = vector.shape_cast %59 : vector<8x16x4xbf16> to vector<128x4xbf16>
    %c6 = arith.constant 6 : index
    %c0_43 = arith.constant 0 : index
    %c0_44 = arith.constant 0 : index
    %61 = vector.load %arg3[%c6, %c0_43, %c0_44] : memref<9x4x32xbf16, #tpu.memory_space<vmem>>, vector<1x4x32xbf16>
    %62 = vector.shape_cast %61 : vector<1x4x32xbf16> to vector<4x32xbf16>
    %cst_45 = arith.constant dense<0.000000e+00> : vector<128x32xf32>
    %63 = tpu.matmul %60, %62, %cst_45 {dimension_numbers = #tpu.dot_dimension_numbers<[1], [0], [0], [1], [0, 0, 1, 1], [], []>} : vector<128x4xbf16>, vector<4x32xbf16>, vector<128x32xf32> -> vector<128x32xf32>
    %64 = arith.addf %55, %63 : vector<128x32xf32>
    %c2_i32_46 = arith.constant 2 : i32
    %65 = arith.addi %0, %c2_i32_46 : i32
    %c0_47 = arith.constant 0 : index
    %66 = arith.index_cast %65 : i32 to index
    %c1_48 = arith.constant 1 : index
    %c0_49 = arith.constant 0 : index
    %67 = vector.load %arg2[%c0_47, %66, %c1_48, %c0_49] : memref<1x18x18x4xbf16, #tpu.memory_space<vmem>>, vector<1x8x16x4xbf16>
    %68 = vector.shape_cast %67 : vector<1x8x16x4xbf16> to vector<8x16x4xbf16>
    %69 = vector.shape_cast %68 : vector<8x16x4xbf16> to vector<128x4xbf16>
    %c7 = arith.constant 7 : index
    %c0_50 = arith.constant 0 : index
    %c0_51 = arith.constant 0 : index
    %70 = vector.load %arg3[%c7, %c0_50, %c0_51] : memref<9x4x32xbf16, #tpu.memory_space<vmem>>, vector<1x4x32xbf16>
    %71 = vector.shape_cast %70 : vector<1x4x32xbf16> to vector<4x32xbf16>
    %cst_52 = arith.constant dense<0.000000e+00> : vector<128x32xf32>
    %72 = tpu.matmul %69, %71, %cst_52 {dimension_numbers = #tpu.dot_dimension_numbers<[1], [0], [0], [1], [0, 0, 1, 1], [], []>} : vector<128x4xbf16>, vector<4x32xbf16>, vector<128x32xf32> -> vector<128x32xf32>
    %73 = arith.addf %64, %72 : vector<128x32xf32>
    %c2_i32_53 = arith.constant 2 : i32
    %74 = arith.addi %0, %c2_i32_53 : i32
    %c0_54 = arith.constant 0 : index
    %75 = arith.index_cast %74 : i32 to index
    %c2_55 = arith.constant 2 : index
    %c0_56 = arith.constant 0 : index
    %76 = vector.load %arg2[%c0_54, %75, %c2_55, %c0_56] : memref<1x18x18x4xbf16, #tpu.memory_space<vmem>>, vector<1x8x16x4xbf16>
    %77 = vector.shape_cast %76 : vector<1x8x16x4xbf16> to vector<8x16x4xbf16>
    %78 = vector.shape_cast %77 : vector<8x16x4xbf16> to vector<128x4xbf16>
    %c8 = arith.constant 8 : index
    %c0_57 = arith.constant 0 : index
    %c0_58 = arith.constant 0 : index
    %79 = vector.load %arg3[%c8, %c0_57, %c0_58] : memref<9x4x32xbf16, #tpu.memory_space<vmem>>, vector<1x4x32xbf16>
    %80 = vector.shape_cast %79 : vector<1x4x32xbf16> to vector<4x32xbf16>
    %cst_59 = arith.constant dense<0.000000e+00> : vector<128x32xf32>
    %81 = tpu.matmul %78, %80, %cst_59 {dimension_numbers = #tpu.dot_dimension_numbers<[1], [0], [0], [1], [0, 0, 1, 1], [], []>} : vector<128x4xbf16>, vector<4x32xbf16>, vector<128x32xf32> -> vector<128x32xf32>
    %82 = arith.addf %73, %81 : vector<128x32xf32>
    %c0_60 = arith.constant 0 : index
    %c0_61 = arith.constant 0 : index
    %83 = vector.load %arg4[%c0_60, %c0_61] : memref<1x32xf32, #tpu.memory_space<vmem>>, vector<1x32xf32>
    %84 = vector.shape_cast %83 : vector<1x32xf32> to vector<32xf32>
    %85 = vector.shape_cast %84 : vector<32xf32> to vector<1x32xf32>
    %86 = vector.broadcast %85 : vector<1x32xf32> to vector<128x32xf32>
    %87 = arith.mulf %82, %86 : vector<128x32xf32>
    %c0_62 = arith.constant 0 : index
    %c0_63 = arith.constant 0 : index
    %88 = vector.load %arg5[%c0_62, %c0_63] : memref<1x32xf32, #tpu.memory_space<vmem>>, vector<1x32xf32>
    %89 = vector.shape_cast %88 : vector<1x32xf32> to vector<32xf32>
    %90 = vector.shape_cast %89 : vector<32xf32> to vector<1x32xf32>
    %91 = vector.broadcast %90 : vector<1x32xf32> to vector<128x32xf32>
    %92 = arith.addf %87, %91 : vector<128x32xf32>
    %cst_64 = arith.constant 0.000000e+00 : f32
    %93 = vector.broadcast %cst_64 : f32 to vector<128x32xf32>
    %94 = arith.maximumf %92, %93 : vector<128x32xf32>
    %95 = vector.shape_cast %94 : vector<128x32xf32> to vector<8x16x32xf32>
    %c0_65 = arith.constant 0 : index
    %c0_66 = arith.constant 0 : index
    %c0_67 = arith.constant 0 : index
    %c0_68 = arith.constant 0 : index
    %96 = vector.load %arg6[%c0_65, %c0_66, %c0_67, %c0_68] : memref<1x8x16x32xf32, #tpu.memory_space<vmem>>, vector<1x8x16x32xf32>
    %97 = vector.shape_cast %96 : vector<1x8x16x32xf32> to vector<8x16x32xf32>
    %98 = vector.shape_cast %95 : vector<8x16x32xf32> to vector<1x8x16x32xf32>
    tpu.vector_store %arg6[%c0_65, %c0_66, %c0_67, %c0_68], %98 {strides = array<i32>} : memref<1x8x16x32xf32, #tpu.memory_space<vmem>>, vector<1x8x16x32xf32>,
    return
  }
  func.func @transform_0(%arg0: i32, %arg1: i32) -> (i32, i32, i32, i32) {
    %c0_i32 = arith.constant 0 : i32
    %c0_i32_0 = arith.constant 0 : i32
    %c0_i32_1 = arith.constant 0 : i32
    %c0_i32_2 = arith.constant 0 : i32
    return %arg0, %c0_i32, %c0_i32_0, %c0_i32_1 : i32, i32, i32, i32
  }
  func.func @transform_1(%arg0: i32, %arg1: i32) -> (i32, i32, i32) {
    %c0_i32 = arith.constant 0 : i32
    %c0_i32_0 = arith.constant 0 : i32
    %c0_i32_1 = arith.constant 0 : i32
    %c0_i32_2 = arith.constant 0 : i32
    return %c0_i32, %c0_i32_0, %c0_i32_1 : i32, i32, i32
  }
  func.func @transform_2(%arg0: i32, %arg1: i32) -> (i32, i32) {
    %c0_i32 = arith.constant 0 : i32
    %c0_i32_0 = arith.constant 0 : i32
    %c0_i32_1 = arith.constant 0 : i32
    return %c0_i32, %c0_i32_0 : i32, i32
  }
  func.func @transform_3(%arg0: i32, %arg1: i32) -> (i32, i32) {
    %c0_i32 = arith.constant 0 : i32
    %c0_i32_0 = arith.constant 0 : i32
    %c0_i32_1 = arith.constant 0 : i32
    return %c0_i32, %c0_i32_0 : i32, i32
  }
  func.func @transform_4(%arg0: i32, %arg1: i32) -> (i32, i32, i32, i32) {
    %c0_i32 = arith.constant 0 : i32
    %c0_i32_0 = arith.constant 0 : i32
    %c0_i32_1 = arith.constant 0 : i32
    return %arg0, %arg1, %c0_i32, %c0_i32_0 : i32, i32, i32, i32
  }
}

</mosaic_0001>

<bundles_post_ra>
// kernel: tpu_custom_call.1
= control target key start
LH: loop header
LB: loop body
LE: loop exit
PB: predicated region body
PF: predicated region fallthrough
CT: control target
= control target key end

     0   :  { %9 = vsyncpa [#allocation3], 0  ;;  %s4923_s0 = inlined_call_operand.vmem [shape: bf16[2,18,18,4], index: 0, kind: input, shape index: {}]   ;;  %s4924_s1 = inlined_call_operand.vmem [shape: bf16[9,4,32], index: 1, kind: input, shape index: {}]   ;;  %s4925_s2 = inlined_call_operand.vmem [shape: f32[1,32], index: 2, kind: input, shape index: {}]   ;;  %s4926_s3 = inlined_call_operand.vmem [shape: f32[1,32], index: 3, kind: input, shape index: {}]   ;;  %s4927_s4 = inlined_call_operand.hbm [shape: f32[2,16,16,32], index: 4, kind: output, shape index: {}]  }
   0x1   :  { %11 = vsyncpa [#allocation3 + $0x1], 0  ;;  %s3631_s15 = smov 0   ;;  %s3633_s16 = smov 0  }
   0x2   :  { %s3635_s17 = smov 0   ;;  %s3637_s18 = smov 0  }
   0x3   :  { %s3639_s19 = smov 0   ;;  %s3641_s20 = smov 0  }
   0x4   :  { %s3643_s21 = smov 0   ;;  %s3645_s22 = smov 0  }
   0x5 LB: > { %s2859_s23 = sadd.s32 4294967295, %s3601_s22   ;;  %s2860_s24 = sadd.s32 4294967294, %s3601_s22   ;;  %s3601_s22 = sphi %s3645_s22, %s17_s22   ;;  %s3597_s21 = sphi %s3643_s21, %s4984_s21   ;;  %s3593_s20 = sphi %s3641_s20, %s4983_s20   ;;  %s3589_s19 = sphi %s3639_s19, %s4982_s19   ;;  %s3585_s18 = sphi %s3637_s18, %s4981_s18   ;;  %s3581_s17 = sphi %s3635_s17, %s4980_s17   ;;  %s3577_s16 = sphi %s3633_s16, %s4979_s16   ;;  %s3573_s15 = sphi %s3631_s15, %s4978_s15  }
   0x6   : > { %s26_s25 = sadd.s32 1, %s3593_s20  ;;  %s29_s26 = sadd.s32 1, %s3597_s21 }
   0x7   : > { %p27_p0 = scmp.ge.s32.totalorder %s26_s25, 2  ;;  %p137_p1 = scmp.ne.s32.totalorder %s3581_s17, %s3577_s16 }
   0x8   : > { %p138_p2 = scmp.eq.s32.totalorder %s2859_s23, 3  ;;  %p143_p5 = scmp.ne.s32.totalorder %s3577_s16, %s3573_s15 }
   0x9   : > { %s4986_s25 = smov (%p27_p0, %s26_s25), 0  ;;  %s4988_s26 = smov (!%p27_p0, %s29_s26), %s3597_s21 }
   0xa   : > { %s123_s27 = ssub.s32 %s3593_s20, %s4986_s25  ;;  %p3682_p3 = por %p138_p2, %p137_p1 }
   0xb   : > { %p31_p4 = scmp.ge.s32.totalorder %s4988_s26, 2  ;;  %p144_p6 = scmp.eq.s32.totalorder %s2860_s24, 3 }
   0xc   : > { %p2863_p7 = scmp.ge.s32.totalorder %s3601_s22, 1  ;;  %p179_p9 = scmp.lt.s32.totalorder %s3601_s22, 5 }
   0xd   : > { %s4990_s26 = smov (%p31_p4, %s4988_s26), 0  ;;  %p3691_p8 = por %p144_p6, %p143_p5 }
   0xe   : > { %s122_s30 = ssub.s32 %s3597_s21, %s4990_s26  ;;  %s127_s5 = sadd.s32 1, %s3581_s17 }
   0xf   : > { %s124_s6 = sor.u32 %s123_s27, %s122_s30  ;;  %p180_p10 = pnand %p2863_p7, %p179_p9 }
  0x10   : > { %p125_p11 = scmp.eq.s32.totalorder %s124_s6, 0 }
  0x11   : > { %183 = sbr.rel (%p180_p10) target bundleno = 422 (0x1a6), region = 36 }
  0x12   : > { %s3700_s7 = scalar_select %p125_p11, %s3581_s17, %s127_s5  }
  0x16   : > { %v2869_v0 = vld [vmem:[%s4924_s1 + $0x2] sm:$0x3]  ;;  %vm487_vm0 = vcmask 1041408   ;;  %p205_p12 = scmp.lt.s32.totalorder %s3589_s19, 1  ;;  %v232_v2 = vld [vmem:[%s4924_s1] sm:$0x3] }
  0x17   : > { %3402 = vmatprep.subr.msk.bf16.mxu1 %vm487_vm0, %v2869_v0  ;;  %3401 = vmatprep.subr.msk.bf16.mxu0 %vm487_vm0, %v2869_v0  ;;  %v489_v1 = vsel %vm487_vm0, %v2869_v0, 0  ;;  %v2910_v3 = vld [vmem:[%s4924_s1 + $0x4] sm:$0x3]  ;;  %s3154_s23 = smul.u32 96, %s3585_s18  ;;  %vm241_vm1 = vsmask.f32 3328 }
  0x18   : > { %3400 = vmatpush3.bf16.msra.mxu1 %v489_v1  ;;  %3238 = vmatpush3.bf16.msra.mxu0 %v489_v1  ;;  %s206_s10 = scalar_select %p205_p12, %s3589_s19, 1  ;;  %vm242_vm2 = vsmask.f32 7440  ;;  %vm462_vm3 = vcmask 31744   ;;  %v3748_v15 = vsel %vm487_vm0, %v232_v2, 0  ;;  %v3768_v34 = vsel %vm487_vm0, %v2910_v3, 0 }
  0x19   : > { %3403 = vmatprep.subr.msk.bf16.mxu1 %vm487_vm0, %v232_v2  ;;  %3404 = vmatprep.subr.msk.bf16.mxu0 %vm487_vm0, %v2910_v3  ;;  %vm3763_vm4 = vmor %vm241_vm1, %vm242_vm2  ;;  %vm776_vm5 = vcmask 1042432   ;;  %vm777_vm6 = vcmask 1046532   ;;  %vm2739_vm8 = vcmask 261120   ;;  %s3155_s14 = sshll.u32 %s3585_s18, 4 }
  0x1a   : > { %s3411_s24 = smul.u32 216, %s206_s10  ;;  %vm3899_vm7 = vmor %vm776_vm5, %vm777_vm6  ;;  %s3603_s10 = smov [#allocation2]  }
  0x1b   : > { %s3513_s11 = sshll.u32 %s3603_s10, 4  ;;  %s3514_s11 = int_to_ptr.vmem [resolvable:$false] %s3513_s11 }
  0x1c   : > { %s209_s5 = scalar_lea.vmem %s4923_s0, %s3411_s24 }
  0x1d   : > { %s3722_s6 = scalar_lea.vmem %s209_s5, %s3154_s23  ;;  %s3150_s23 = sshll.u32 %s3589_s19, 5 }
  0x1e   : > { %v3725_v4 = vld [vmem:[%s3722_s6] sm:$0xf]  ;;  %v3728_v5 = vld [vmem:[%s3722_s6 + $0x4] sm:$0xf]  ;;  %v3731_v6 = vld [vmem:[%s3722_s6 + $0x8] sm:$0x1]  ;;  %s2770_s24 = sadd.s32 %s3155_s14, %s3150_s23 }
  0x1f   : > { %v245_v7 = vshrl.u32 %v3725_v4, 16  ;;  %v248_v8 = vshll.u32 %v3725_v4, 16  ;;  %v254_v9 = vshll.u32 %v3728_v5, 16  ;;  %v258_v10 = vshrl.u32 %v3728_v5, 16  ;;  %v3738_v11 = vld [vmem:[%s3722_s6 + $0x30] sm:$0xf] }
  0x20   : > { %v264_v12 = vshll.u32 %v3731_v6, 16  ;;  %v3742_v13 = vld [vmem:[%s3722_s6 + $0x34] sm:$0xf]  ;;  %v3745_v14 = vld [vmem:[%s3722_s6 + $0x38] sm:$0x1]  ;;  %v341_v21 = vshrl.u32 %v3738_v11, 16 }
  0x21   : > { %v247_v16 = vrot.slane %v245_v7, 4  ;;  %v250_v17 = vrot.slane %v248_v8, 5  ;;  %v256_v18 = vrot.slane %v254_v9, 5  ;;  %v260_v19 = vrot.slane %v258_v10, 4  ;;  %v3756_v28 = vld [vmem:[%s3722_s6 + $0xc] sm:$0xf] }
  0x22   : > { %v266_v20 = vrot.slane %v264_v12, 5  ;;  %v344_v22 = vshll.u32 %v3738_v11, 16  ;;  %v350_v23 = vshll.u32 %v3742_v13, 16  ;;  %v354_v26 = vshrl.u32 %v3742_v13, 16  ;;  %v3759_v29 = vld [vmem:[%s3722_s6 + $0x10] sm:$0xf] }
  0x23   : > { %v251_v24 = vor.u32 %v250_v17, %v247_v16  ;;  %v261_v25 = vor.u32 %v260_v19, %v256_v18  ;;  %v360_v27 = vshll.u32 %v3745_v14, 16  ;;  %v343_v31 = vrot.slane %v341_v21, 4  ;;  %v3771_v40 = vld [vmem:[%s3722_s6 + $0x14] sm:$0x1]  ;;  %v3782_v52 = vld [vmem:[%s3722_s6 + $0x3c] sm:$0xf] }
  0x24   : > { %v346_v32 = vrot.slane %v344_v22, 5  ;;  %v352_v33 = vrot.slane %v350_v23, 5  ;;  %v356_v37 = vrot.slane %v354_v26, 4  ;;  %v269_v41 = vshrl.u32 %v3756_v28, 16  ;;  %v3786_v57 = vld [vmem:[%s3722_s6 + $0x40] sm:$0xf] }
  0x25   : > { %v252_v35 = vrot.slane %v251_v24, 4  ;;  %v262_v36 = vrot.slane %v261_v25, 4  ;;  %v362_v38 = vrot.slane %v360_v27, 5  ;;  %v272_v42 = vshll.u32 %v3756_v28, 16  ;;  %v3794_v62 = vld [vmem:[%s3722_s6 + $0x44] sm:$0x1] }
  0x26   : > { %v347_v39 = vor.u32 %v346_v32, %v343_v31  ;;  %v278_v43 = vshll.u32 %v3759_v29, 16  ;;  %v357_v46 = vor.u32 %v356_v37, %v352_v33  ;;  %v282_v47 = vshrl.u32 %v3759_v29, 16  ;;  %v3800_v3 = vld [vmem:[%s3722_s6 + $0x18] sm:$0xf]  ;;  %v3807_v19 = vld [vmem:[%s3722_s6 + $0x1c] sm:$0xf] }
  0x27   : > { %v257_v44 = vsel %vm3763_vm4, %v252_v35, %v256_v18  ;;  %v267_v45 = vsel %vm3763_vm4, %v262_v36, %v266_v20  ;;  %v271_v50 = vrot.slane %v269_v41, 4  ;;  %v274_v51 = vrot.slane %v272_v42, 5  ;;  %v3813_v23 = vld [vmem:[%s3722_s6 + $0x20] sm:$0x1]  ;;  %v3820_v32 = vld [vmem:[%s3722_s6 + $0x48] sm:$0xf] }
  0x28   : > { %v2870_v48 = vcombine.low %v257_v44, %v267_v45  ;;  %v348_v49 = vrot.slane %v347_v39, 4  ;;  %v358_v53 = vrot.slane %v357_v46, 4  ;;  %v280_v54 = vrot.slane %v278_v43, 5  ;;  %v3831_v44 = vld [vmem:[%s3722_s6 + $0x4c] sm:$0xf]  ;;  %s3151_s18 = sshll.u32 %s2770_s24, 7 }
  0x29   : > { %v284_v55 = vrot.slane %v282_v47, 4  ;;  %v288_v56 = vshll.u32 %v3771_v40, 16  ;;  %v784_v58 = vrot.slane %v3731_v6, 5  ;;  %v275_v60 = vor.u32 %v274_v51, %v271_v50  ;;  %s4862_s5 = scalar_lea.hbm %s4927_s4, %s3151_s18 }
  0x2a   : > { %3239 = vmatprep.mubr.msk.bf16.mxu0 %vm462_vm3, %v2870_v48  ;;  %v353_v59 = vsel %vm3763_vm4, %v348_v49, %v352_v33  ;;  %v788_v61 = vrot.slane %v3759_v29, 5  ;;  %v363_v63 = vsel %vm3763_vm4, %v358_v53, %v362_v38  ;;  %v365_v2 = vshrl.u32 %v3782_v52, 16  ;;  %v3826_v38 = vld [vmem:[%s4924_s1 + $0x8] sm:$0x3] }
  0x2b   : > { %v285_v0 = vor.u32 %v284_v55, %v280_v54  ;;  %v290_v1 = vrot.slane %v288_v56, 5  ;;  %v2874_v7 = vcombine.low %v353_v59, %v363_v63  ;;  %v276_v8 = vrot.slane %v275_v60, 4  ;;  %v3844_v63 = vld [vmem:[%s3722_s6 + $0x24] sm:$0xf] }
  0x2c   : > { %v368_v9 = vshll.u32 %v3782_v52, 16  ;;  %v374_v10 = vshll.u32 %v3786_v57, 16  ;;  %v367_v16 = vrot.slane %v365_v2, 4  ;;  %v378_v17 = vshrl.u32 %v3786_v57, 16 }
  0x2d   : > { %v286_v12 = vrot.slane %v285_v0, 4  ;;  %v384_v18 = vshll.u32 %v3794_v62, 16  ;;  %3247 = vmatprep.mubr.msk.bf16.mxu1 %vm462_vm3, %v2874_v7  ;;  %v281_v20 = vsel %vm3763_vm4, %v276_v8, %v280_v54  ;;  %v293_v24 = vshrl.u32 %v3800_v3, 16  ;;  %v3838_v54 = vld [vmem:[%s3722_s6 + $0x50] sm:$0x1] }
  0x2e   : > { %v370_v21 = vrot.slane %v368_v9, 5  ;;  %v376_v22 = vrot.slane %v374_v10, 5  ;;  %v380_v26 = vrot.slane %v378_v17, 4  ;;  %v296_v31 = vshll.u32 %v3800_v3, 16  ;;  %v3852_v7 = vld [vmem:[%s3722_s6 + $0x28] sm:$0xf] }
  0x2f   : > { %v291_v25 = vsel %vm3763_vm4, %v286_v12, %v290_v1  ;;  %v386_v27 = vrot.slane %v384_v18, 5  ;;  %v295_v36 = vrot.slane %v293_v24, 4  ;;  %v302_v37 = vshll.u32 %v3807_v19, 16  ;;  %v3857_v8 = vld [vmem:[%s4924_s1 + $0x6] sm:$0x3] }
  0x30   : > { %v2871_v33 = vcombine.low %v281_v20, %v291_v25  ;;  %v371_v35 = vor.u32 %v370_v21, %v367_v16  ;;  %v381_v39 = vor.u32 %v380_v26, %v376_v22  ;;  %v298_v41 = vrot.slane %v296_v31, 5  ;;  %v3861_v17 = vld [vmem:[%s3722_s6 + $0x2c] sm:$0x1]  ;;  %v3867_v24 = vld [vmem:[%s3722_s6 + $0x54] sm:$0xf] }
  0x31   : > { %v306_v42 = vshrl.u32 %v3807_v19, 16  ;;  %v312_v43 = vshll.u32 %v3813_v23, 16  ;;  %v304_v46 = vrot.slane %v302_v37, 5  ;;  %v389_v47 = vshrl.u32 %v3820_v32, 16 }
  0x32   : > { %3240 = vmatmul.mubr.msk.bf16.vlgmr.msra.gmra.mxu0 %vm462_vm3, %v2871_v33  ;;  %v372_v45 = vrot.slane %v371_v35, 4  ;;  %v392_v48 = vshll.u32 %v3820_v32, 16  ;;  %v382_v49 = vrot.slane %v381_v39, 4  ;;  %v299_v50 = vor.u32 %v298_v41, %v295_v36  ;;  %v3873_v33 = vld [vmem:[%s3722_s6 + $0x58] sm:$0xf] }
  0x33   : > { %3274 = vmatpush3.bf16.msra.mxu0 %v3768_v34  ;;  %v308_v51 = vrot.slane %v306_v42, 4  ;;  %v314_v53 = vrot.slane %v312_v43, 5  ;;  %v391_v56 = vrot.slane %v389_v47, 4  ;;  %v398_v60 = vshll.u32 %v3831_v44, 16 }
  0x34   : > { %v377_v55 = vsel %vm3763_vm4, %v372_v45, %v376_v22  ;;  %v394_v59 = vrot.slane %v392_v48, 5  ;;  %3406 = vmatprep.subr.msk.bf16.mxu0 %vm487_vm0, %v3826_v38  ;;  %v387_v34 = vsel %vm3763_vm4, %v382_v49, %v386_v27  ;;  %v300_v0 = vrot.slane %v299_v50, 4  ;;  %v752_v50 = vld [vmem:[%s3722_s6] sm:$0xe] }
  0x35   : > { %v309_v1 = vor.u32 %v308_v51, %v304_v46  ;;  %v402_v2 = vshrl.u32 %v3831_v44, 16  ;;  %v2875_v9 = vcombine.low %v377_v55, %v387_v34  ;;  %v400_v12 = vrot.slane %v398_v60, 5 }
  0x36   : > { %v395_v10 = vor.u32 %v394_v59, %v391_v56  ;;  %v408_v16 = vshll.u32 %v3838_v54, 16  ;;  %v305_v18 = vsel %vm3763_vm4, %v300_v0, %v304_v46  ;;  %v317_v22 = vshrl.u32 %v3844_v63, 16  ;;  %v3882_v46 = vld [vmem:[%s3722_s6 + $0x5c] sm:$0x1] }
  0x37   : > { %v310_v20 = vrot.slane %v309_v1, 4  ;;  %v404_v21 = vrot.slane %v402_v2, 4  ;;  %3248 = vmatmul.mubr.msk.bf16.vlgmr.msra.gmra.mxu1 %vm462_vm3, %v2875_v9  ;;  %v320_v27 = vshll.u32 %v3844_v63, 16  ;;  %v326_v31 = vshll.u32 %v3852_v7, 16 }
  0x38   : > { %v396_v25 = vrot.slane %v395_v10, 4  ;;  %v410_v26 = vrot.slane %v408_v16, 5  ;;  %3256 = vmatpush3.bf16.msra.mxu1 %v3748_v15  ;;  %v319_v37 = vrot.slane %v317_v22, 4  ;;  %v330_v39 = vshrl.u32 %v3852_v7, 16 }
  0x39   : > { %v315_v35 = vsel %vm3763_vm4, %v310_v20, %v314_v53  ;;  %v405_v36 = vor.u32 %v404_v21, %v400_v12  ;;  %v322_v43 = vrot.slane %v320_v27, 5  ;;  %v328_v45 = vrot.slane %v326_v31, 5  ;;  %3405 = vmatprep.subr.msk.bf16.mxu1 %vm487_vm0, %v3857_v8 }
  0x3a   : > { %v2872_v41 = vcombine.low %v305_v18, %v315_v35  ;;  %v401_v42 = vsel %vm3763_vm4, %v396_v25, %v400_v12  ;;  %v332_v15 = vrot.slane %v330_v39, 4  ;;  %v336_v48 = vshll.u32 %v3861_v17, 16  ;;  %v753_v12 = vld [vmem:[%s3722_s6 + $0xc] sm:$0xe] }
  0x3b   : > { %v406_v47 = vrot.slane %v405_v36, 4  ;;  %v413_v49 = vshrl.u32 %v3867_v24, 16  ;;  %v323_v51 = vor.u32 %v322_v43, %v319_v37  ;;  %v416_v53 = vshll.u32 %v3867_v24, 16 }
  0x3c   : > { %3243 = vmatprep.mubr.msk.bf16.mxu0 %vm462_vm3, %v2872_v41  ;;  %v422_v55 = vshll.u32 %v3873_v33, 16  ;;  %v426_v56 = vshrl.u32 %v3873_v33, 16  ;;  %v333_v60 = vor.u32 %v332_v15, %v328_v45  ;;  %v338_v34 = vrot.slane %v336_v48, 5  ;;  %v754_v41 = vld [vmem:[%s3722_s6 + $0x18] sm:$0xe] }
  0x3d   : > { %v411_v59 = vsel %vm3763_vm4, %v406_v47, %v410_v26  ;;  %v415_v0 = vrot.slane %v413_v49, 4  ;;  %v324_v2 = vrot.slane %v323_v51, 4  ;;  %v418_v9 = vrot.slane %v416_v53, 5 }
  0x3e   : > { %v2876_v1 = vcombine.low %v401_v42, %v411_v59  ;;  %v424_v10 = vrot.slane %v422_v55, 5  ;;  %v334_v16 = vrot.slane %v333_v60, 4  ;;  %v428_v18 = vrot.slane %v426_v56, 4  ;;  %v756_v55 = vld [vmem:[%s3722_s6 + $0x30] sm:$0xe] }
  0x3f   : > { %v432_v20 = vshll.u32 %v3882_v46, 16  ;;  %v2902_v22 = vrot.slane %v752_v50, 9  ;;  %v791_v25 = vrot.slane %v3771_v40, 5  ;;  %v329_v26 = vsel %vm3763_vm4, %v324_v2, %v328_v45 }
  0x40   : > { %3251 = vmatprep.mubr.msk.bf16.mxu1 %vm462_vm3, %v2876_v1  ;;  %v419_v27 = vor.u32 %v418_v9, %v415_v0  ;;  %v781_v31 = vrot.slane %v3728_v5, 5  ;;  %v339_v35 = vsel %vm3763_vm4, %v334_v16, %v338_v34  ;;  %v429_v36 = vor.u32 %v428_v18, %v424_v10  ;;  %v3054_v1 = vld [vmem:[%s4924_s1 + $0xc] sm:$0x3] }
  0x41   : > { %v434_v37 = vrot.slane %v432_v20, 5  ;;  %v2903_v39 = vrot.slane %v753_v12, 9  ;;  %v2873_v42 = vcombine.low %v329_v26, %v339_v35  ;;  %v2886_v45 = vcombine.low %v3725_v4, %v3728_v5  ;;  %v755_v5 = vld [vmem:[%s3722_s6 + $0x24] sm:$0xe]  ;;  %v757_v12 = vld [vmem:[%s3722_s6 + $0x3c] sm:$0xe] }
  0x42   : > { %v420_v43 = vrot.slane %v419_v27, 4  ;;  %v782_v40 = vsel %vm3899_vm7, %v2902_v22, %v781_v31  ;;  %v783_v47 = vrot.slane %v781_v31, 4  ;;  %v430_v15 = vrot.slane %v429_v36, 4 }
  0x43   : > { %v789_v48 = vsel %vm3899_vm7, %v2903_v39, %v788_v61  ;;  %v790_v49 = vrot.slane %v788_v61, 4  ;;  %3244 = vmatmul.mubr.msk.bf16.gmra.mxu0 %vm462_vm3, %v2873_v42  ;;  %v2904_v53 = vrot.slane %v754_v41, 9  ;;  %v795_v4 = vrot.slane %v3807_v19, 5  ;;  %v758_v41 = vld [vmem:[%s3722_s6 + $0x48] sm:$0xe] }
  0x44   : > { %v425_v50 = vsel %vm3763_vm4, %v420_v43, %v424_v10  ;;  %v785_v51 = vsel %vm3899_vm7, %v783_v47, %v784_v58  ;;  %v435_v56 = vsel %vm3763_vm4, %v430_v15, %v434_v37  ;;  %v798_v60 = vrot.slane %v3813_v23, 5  ;;  %v3977_v42 = vld [vmem:[%s3722_s6 + $0x54] sm:$0xe]  ;;  %v2962_v43 = vld [vmem:[%s3722_s6 + $0xc] sm:$0xf] }
  0x45   : > { %v2911_v61 = vcombine.low %v782_v40, %v785_v51  ;;  %v792_v59 = vsel %vm3899_vm7, %v790_v49, %v791_v25  ;;  %v2877_v34 = vcombine.low %v425_v50, %v435_v56  ;;  %v1088_v6 = vsel %vm487_vm0, %v3857_v8, 0  ;;  %v3997_v49 = vld [vmem:[%s4924_s1 + $0xa] sm:$0x3] }
  0x46   : > { %v796_v58 = vsel %vm3899_vm7, %v2904_v53, %v795_v4  ;;  %v797_v0 = vrot.slane %v795_v4, 4  ;;  %v812_v2 = vrot.slane %v3745_v14, 5  ;;  %v2905_v9 = vrot.slane %v755_v5, 9  ;;  %v2965_v5 = vld [vmem:[%s3722_s6 + $0x18] sm:$0xf] }
  0x47   : > { %3275 = vmatprep.mubr.msk.bf16.mxu0 %vm462_vm3, %v2911_v61  ;;  %v802_v10 = vrot.slane %v3852_v7, 5  ;;  %v805_v23 = vrot.slane %v3861_v17, 5  ;;  %3252 = vmatmul.mubr.msk.bf16.gmra.mxu1 %vm462_vm3, %v2877_v34  ;;  %v2912_v8 = vcombine.low %v789_v48, %v792_v59  ;;  %v2906_v18 = vrot.slane %v756_v55, 9  ;;  %v3992_v48 = vld [vmem:[%s3722_s6 + $0x14] sm:$0x1] }
  0x48   : > { %v799_v16 = vsel %vm3899_vm7, %v797_v0, %v798_v60  ;;  %v809_v20 = vrot.slane %v3742_v13, 5  ;;  %3257 = vmatprep.mubr.msk.bf16.mxu1 %vm462_vm3, %v2886_v45  ;;  %v1470_v14 = vsel %vm487_vm0, %v3826_v38, 0  ;;  %v3956_v17 = vsel %vm487_vm0, %v3054_v1, 0  ;;  %v4008_v60 = vld [vmem:[%s3722_s6 + $0x1c] sm:$0xf] }
  0x49   : > { %v2913_v22 = vcombine.low %v796_v58, %v799_v16  ;;  %v804_v25 = vrot.slane %v802_v10, 4  ;;  %v2887_v26 = vcombine.low %v3756_v28, %v3759_v29  ;;  %v2907_v31 = vrot.slane %v757_v12, 9 }
  0x4a   : > { %v811_v27 = vrot.slane %v809_v20, 4  ;;  %v816_v35 = vrot.slane %v3786_v57, 5  ;;  %v2888_v36 = vcombine.low %v3800_v3, %v3807_v19  ;;  %v803_v38 = vsel %vm3899_vm7, %v2905_v9, %v802_v10 }
  0x4b   : > { %v806_v37 = vsel %vm3899_vm7, %v804_v25, %v805_v23  ;;  %v810_v39 = vsel %vm3899_vm7, %v2906_v18, %v809_v20  ;;  %3276 = vmatmul.mubr.msk.bf16.vlgmr.msra.gmra.mxu0 %vm462_vm3, %v2912_v8  ;;  %v2889_v28 = vcombine.low %v3844_v63, %v3852_v7  ;;  %v819_v19 = vrot.slane %v3794_v62, 5  ;;  %v3989_v62 = vld [vmem:[%s3722_s6 + $0x10] sm:$0xf] }
  0x4c   : > { %v813_v29 = vsel %vm3899_vm7, %v811_v27, %v812_v2  ;;  %v818_v3 = vrot.slane %v816_v35, 4  ;;  %3310 = vmatpush3.bf16.msra.mxu0 %v1470_v14  ;;  %3279 = vmatprep.mubr.msk.bf16.mxu0 %vm462_vm3, %v2913_v22  ;;  %v2890_v40 = vcombine.low %v3738_v11, %v3742_v13  ;;  %v2891_v47 = vcombine.low %v3782_v52, %v3786_v57  ;;  %v2968_v2 = vld [vmem:[%s3722_s6 + $0x24] sm:$0xf]  ;;  %v4031_v22 = vld [vmem:[%s3722_s6 + $0x20] sm:$0x1] }
  0x4d   : > { %v2892_v15 = vcombine.low %v3820_v32, %v3831_v44  ;;  %v823_v45 = vrot.slane %v3831_v44, 5  ;;  %v2914_v50 = vcombine.low %v803_v38, %v806_v37  ;;  %v2915_v51 = vcombine.low %v810_v39, %v813_v29  ;;  %3408 = vmatprep.subr.msk.bf16.mxu0 %vm487_vm0, %v3054_v1  ;;  %v2974_v13 = vld [vmem:[%s3722_s6 + $0x3c] sm:$0xf]  ;;  %v4104_v57 = vld [vmem:[%s3722_s6 + $0x4c] sm:$0xf] }
  0x4e   : > { %v4001_v53 = vsel %vm3899_vm7, %v2907_v31, %v816_v35  ;;  %v2908_v4 = vrot.slane %v758_v41, 9  ;;  %v826_v56 = vrot.slane %v3838_v54, 5  ;;  %v830_v61 = vrot.slane %v3873_v33, 5  ;;  %v4037_v35 = vld [vmem:[%s3722_s6 + $0x28] sm:$0xf] }
  0x4f   : > { %v825_v55 = vrot.slane %v823_v45, 4  ;;  %v1228_v59 = vshrl.u32 %v2962_v43, 16  ;;  %3258 = vmatmul.mubr.msk.bf16.vlgmr.msra.gmra.mxu1 %vm462_vm3, %v2887_v26  ;;  %v4013_v34 = vsel %vm3899_vm7, %v818_v3, %v819_v19  ;;  %v2893_v58 = vcombine.low %v3867_v24, %v3873_v33 }
  0x50   : > { %v1231_v0 = vshll.u32 %v2962_v43, 16  ;;  %v1237_v1 = vshll.u32 %v3989_v62, 16  ;;  %3292 = vmatpush3.bf16.msra.mxu1 %v1088_v6  ;;  %3261 = vmatprep.mubr.msk.bf16.mxu1 %vm462_vm3, %v2888_v36  ;;  %v2909_v54 = vrot.slane %v3977_v42, 9  ;;  %v1241_v10 = vshrl.u32 %v3989_v62, 16  ;;  %v4043_v42 = vld [vmem:[%s3722_s6 + $0x2c] sm:$0x1] }
  0x51   : > { %v1230_v9 = vrot.slane %v1228_v59, 4  ;;  %v1247_v23 = vshll.u32 %v3992_v48, 16  ;;  %v824_v12 = vsel %vm3899_vm7, %v2908_v4, %v823_v45  ;;  %v833_v8 = vrot.slane %v3882_v46, 5  ;;  %3407 = vmatprep.subr.msk.bf16.mxu1 %vm487_vm0, %v3997_v49 }
  0x52   : > { %v1233_v16 = vrot.slane %v1231_v0, 5  ;;  %v1239_v18 = vrot.slane %v1237_v1, 5  ;;  %v827_v6 = vsel %vm3899_vm7, %v825_v55, %v826_v56  ;;  %v832_v20 = vrot.slane %v830_v61, 4 }
  0x53   : > { %v1243_v14 = vrot.slane %v1241_v10, 4  ;;  %v1252_v25 = vshrl.u32 %v2965_v5, 16  ;;  %3280 = vmatmul.mubr.msk.bf16.gmra.mxu0 %vm462_vm3, %v2914_v50  ;;  %v1255_v27 = vshll.u32 %v2965_v5, 16  ;;  %v1261_v46 = vshll.u32 %v4008_v60, 16  ;;  %v2971_v5 = vld [vmem:[%s3722_s6 + $0x30] sm:$0xf] }
  0x54   : > { %v1234_v26 = vor.u32 %v1233_v16, %v1230_v9  ;;  %v1265_v31 = vshrl.u32 %v4008_v60, 16  ;;  %3283 = vmatprep.mubr.msk.bf16.mxu0 %vm462_vm3, %v2915_v51  ;;  %v1249_v38 = vrot.slane %v1247_v23, 5  ;;  %v1276_v39 = vshrl.u32 %v2968_v2, 16  ;;  %v4076_v9 = vld [vmem:[%s3722_s6 + $0x38] sm:$0x1] }
  0x55   : > { %v1244_v36 = vor.u32 %v1243_v14, %v1239_v18  ;;  %v1254_v37 = vrot.slane %v1252_v25, 4  ;;  %v1257_v29 = vrot.slane %v1255_v27, 5  ;;  %v4040_v3 = vrot.slane %v1261_v46, 5  ;;  %v4083_v25 = vld [vmem:[%s3722_s6 + $0x40] sm:$0xf] }
  0x56   : > { %v1235_v41 = vrot.slane %v1234_v26, 4  ;;  %v1267_v19 = vrot.slane %v1265_v31, 4  ;;  %v2916_v43 = vcombine.low %v4001_v53, %v4013_v34  ;;  %v1278_v50 = vrot.slane %v1276_v39, 4  ;;  %v4064_v34 = vld [vmem:[%s3722_s6 + $0x34] sm:$0xf] }
  0x57   : > { %v1245_v45 = vrot.slane %v1244_v36, 4  ;;  %v1279_v4 = vshll.u32 %v2968_v2, 16  ;;  %3262 = vmatmul.mubr.msk.bf16.gmra.mxu1 %vm462_vm3, %v2889_v28  ;;  %v2917_v51 = vcombine.low %v824_v12, %v827_v6  ;;  %v831_v55 = vsel %vm3899_vm7, %v2909_v54, %v830_v61  ;;  %v4089_v36 = vld [vmem:[%s3722_s6 + $0x44] sm:$0x1] }
  0x58   : > { %v1271_v56 = vshll.u32 %v4031_v22, 16  ;;  %v1285_v59 = vshll.u32 %v4037_v35, 16  ;;  %3265 = vmatprep.mubr.msk.bf16.mxu1 %vm462_vm3, %v2890_v40  ;;  %v834_v63 = vsel %vm3899_vm7, %v832_v20, %v833_v8  ;;  %v1258_v7 = vor.u32 %v1257_v29, %v1254_v37 }
  0x59   : > { %v1281_v53 = vrot.slane %v1279_v4, 5  ;;  %v1289_v28 = vshrl.u32 %v4037_v35, 16  ;;  %v1240_v61 = vsel %vm3763_vm4, %v1235_v41, %v1239_v18  ;;  %v1250_v0 = vsel %vm3763_vm4, %v1245_v45, %v1249_v38 }
  0x5a   : > { %v1268_v1 = vor.u32 %v1267_v19, %v4040_v3  ;;  %v4071_v11 = vrot.slane %v1285_v59, 5  ;;  %v1295_v54 = vshll.u32 %v4043_v42, 16  ;;  %v1300_v10 = vshrl.u32 %v2971_v5, 16 }
  0x5b   : > { %v1282_v40 = vor.u32 %v1281_v53, %v1278_v50  ;;  %v1291_v2 = vrot.slane %v1289_v28, 4  ;;  %3284 = vmatmul.mubr.msk.bf16.gmra.mxu0 %vm462_vm3, %v2916_v43  ;;  %v2918_v23 = vcombine.low %v831_v55, %v834_v63  ;;  %v1273_v12 = vrot.slane %v1271_v56, 5  ;;  %v2977_v50 = vld [vmem:[%s3722_s6 + $0x48] sm:$0xf] }
  0x5c   : > { %v1303_v8 = vshll.u32 %v2971_v5, 16  ;;  %v1309_v16 = vshll.u32 %v4064_v34, 16  ;;  %3287 = vmatprep.mubr.msk.bf16.mxu0 %vm462_vm3, %v2917_v51  ;;  %v2987_v18 = vcombine.low %v1240_v61, %v1250_v0  ;;  %v1259_v6 = vrot.slane %v1258_v7, 4  ;;  %v3493_v61 = vld [vmem:[%s3722_s6 + $0xc] sm:$0xff]  }
  0x5d   : > { %v1292_v20 = vor.u32 %v1291_v2, %v4071_v11  ;;  %v1302_v14 = vrot.slane %v1300_v10, 4  ;;  %v1269_v26 = vrot.slane %v1268_v1, 4  ;;  %v1313_v31 = vshrl.u32 %v4064_v34, 16  ;;  %v2980_v2 = vld [vmem:[%s3722_s6 + $0x54] sm:$0xf] }
  0x5e   : > { %v1305_v27 = vrot.slane %v1303_v8, 5  ;;  %v4085_v46 = vrot.slane %v1309_v16, 5  ;;  %v1283_v38 = vrot.slane %v1282_v40, 4  ;;  %v1297_v37 = vrot.slane %v1295_v54, 5 }
  0x5f   : > { %v1324_v39 = vshrl.u32 %v2974_v13, 16  ;;  %v1327_v41 = vshll.u32 %v2974_v13, 16  ;;  %3266 = vmatmul.mubr.msk.bf16.gmra.mxu1 %vm462_vm3, %v2891_v47  ;;  %v1293_v29 = vrot.slane %v1292_v20, 4  ;;  %v1315_v19 = vrot.slane %v1313_v31, 4 }
  0x60   : > { %v1319_v43 = vshll.u32 %v4076_v9, 16  ;;  %v1333_v45 = vshll.u32 %v4083_v25, 16  ;;  %3269 = vmatprep.mubr.msk.bf16.mxu1 %vm462_vm3, %v2892_v15  ;;  %v1306_v4 = vor.u32 %v1305_v27, %v1302_v14  ;;  %v1337_v52 = vshrl.u32 %v4083_v25, 16 }
  0x61   : > { %v1326_v5 = vrot.slane %v1324_v39, 4  ;;  %v1329_v51 = vrot.slane %v1327_v41, 5  ;;  %v1264_v47 = vsel %vm3763_vm4, %v1259_v6, %v4040_v3  ;;  %v1274_v55 = vsel %vm3763_vm4, %v1269_v26, %v1273_v12  ;;  %v4128_v12 = vld [vmem:[%s3722_s6 + $0x58] sm:$0xf]  ;;  %v4146_v39 = vld [vmem:[%s3722_s6 + $0x5c] sm:$0x1] }
  0x62   : > { %v1316_v56 = vor.u32 %v1315_v19, %v4085_v46  ;;  %v4112_v32 = vrot.slane %v1333_v45, 5  ;;  %v1339_v15 = vrot.slane %v1337_v52, 4  ;;  %v1343_v59 = vshll.u32 %v4089_v36, 16  ;;  %v3494_v52 = vld [vmem:[%s3722_s6 + $0x18] sm:$0xff]  }
  0x63   : > { %v1330_v44 = vor.u32 %v1329_v51, %v1326_v5  ;;  %v1348_v63 = vshrl.u32 %v2977_v50, 16  ;;  %3288 = vmatmul.mubr.msk.bf16.gmra.mxu0 %vm462_vm3, %v2918_v23  ;;  %v1288_v3 = vsel %vm3763_vm4, %v1283_v38, %v4071_v11  ;;  %v1298_v7 = vsel %vm3763_vm4, %v1293_v29, %v1297_v37  ;;  %v4163_v51 = vld [vmem:[%s4924_s1 + $0x10] sm:$0x3] }
  0x64   : > { %v1351_v53 = vshll.u32 %v2977_v50, 16  ;;  %v1357_v28 = vshll.u32 %v4104_v57, 16  ;;  %3311 = vmatprep.mubr.msk.bf16.mxu0 %vm462_vm3, %v2987_v18  ;;  %v1307_v0 = vrot.slane %v1306_v4, 4  ;;  %v1317_v1 = vrot.slane %v1316_v56, 4  ;;  %v4131_v18 = vld [vmem:[%s3722_s6 + $0x50] sm:$0x1] }
  0x65   : > { %v1321_v13 = vrot.slane %v1319_v43, 5  ;;  %v1340_v40 = vor.u32 %v1339_v15, %v4112_v32  ;;  %v1331_v54 = vrot.slane %v1330_v44, 4  ;;  %v1350_v10 = vrot.slane %v1348_v63, 4  ;;  %v4156_v43 = vld [vmem:[%s3722_s6 + $0x64] sm:$0xf] }
  0x66   : > { %v1353_v23 = vrot.slane %v1351_v53, 5  ;;  %v1361_v11 = vshrl.u32 %v4104_v57, 16  ;;  %v2988_v8 = vcombine.low %v1264_v47, %v1274_v55  ;;  %v2989_v16 = vcombine.low %v1288_v3, %v1298_v7  ;;  %v3495_v44 = vld [vmem:[%s3722_s6 + $0x24] sm:$0xff]  }
  0x67   : > { %v1341_v6 = vrot.slane %v1340_v40, 4  ;;  %v1345_v20 = vrot.slane %v1343_v59, 5  ;;  %3270 = vmatmul.mubr.msk.bf16.gmra.mxu1 %vm462_vm3, %v2893_v58  ;;  %v4137_v14 = vrot.slane %v1357_v28, 5  ;;  %v1372_v27 = vshrl.u32 %v2980_v2, 16  ;;  %v2983_v58 = vld [vmem:[%s3722_s6 + $0x60] sm:$0xf] }
  0x68   : > { %v1363_v26 = vrot.slane %v1361_v11, 4  ;;  %v1375_v31 = vshll.u32 %v2980_v2, 16  ;;  %3293 = vmatprep.mubr.msk.bf16.mxu1 %vm462_vm3, %v3493_v61  ;;  %v1312_v38 = vsel %vm3763_vm4, %v1307_v0, %v4085_v46  ;;  %v1322_v37 = vsel %vm3763_vm4, %v1317_v1, %v1321_v13  ;;  %v3095_v0 = vld [vmem:[%s4924_s1 + $0xe] sm:$0x3]  ;;  %v4184_v11 = vld [vmem:[%s3722_s6 + $0x68] sm:$0x1] }
  0x69   : > { %v1381_v24 = vshll.u32 %v4128_v12, 16  ;;  %v1385_v33 = vshrl.u32 %v4128_v12, 16  ;;  %v1336_v41 = vsel %vm3763_vm4, %v1331_v54, %v4112_v32  ;;  %v1354_v29 = vor.u32 %v1353_v23, %v1350_v10 }
  0x6a   : > { %v1367_v19 = vshll.u32 %v4131_v18, 16  ;;  %v1374_v46 = vrot.slane %v1372_v27, 4  ;;  %v1346_v45 = vsel %vm3763_vm4, %v1341_v6, %v1345_v20  ;;  %v1377_v50 = vrot.slane %v1375_v31, 5 }
  0x6b   : > { %v1383_v4 = vrot.slane %v1381_v24, 5  ;;  %v1387_v5 = vrot.slane %v1385_v33, 4  ;;  %3312 = vmatmul.mubr.msk.bf16.vlgmr.msra.gmra.mxu0 %vm462_vm3, %v2988_v8  ;;  %v1364_v47 = vor.u32 %v1363_v26, %v4137_v14  ;;  %v1391_v55 = vshll.u32 %v4146_v39, 16  ;;  %v3496_v8 = vld [vmem:[%s3722_s6 + $0x30] sm:$0xff]   ;;  %v3497_v26 = vld [vmem:[%s3722_s6 + $0x3c] sm:$0xff]  }
  0x6c   : > { %v1396_v56 = vshrl.u32 %v2983_v58, 16  ;;  %v1399_v32 = vshll.u32 %v2983_v58, 16  ;;  %3346 = vmatpush3.bf16.msra.mxu0 %v3956_v17  ;;  %3315 = vmatprep.mubr.msk.bf16.mxu0 %vm462_vm3, %v2989_v16  ;;  %v1378_v15 = vor.u32 %v1377_v50, %v1374_v46  ;;  %v1405_v63 = vshll.u32 %v4156_v43, 16  ;;  %v3003_v33 = vld [vmem:[%s3722_s6 + $0xc] sm:$0xe] }
  0x6d   : > { %v1388_v59 = vor.u32 %v1387_v5, %v1383_v4  ;;  %v1724_v3 = vsel %vm487_vm0, %v3997_v49, 0  ;;  %v1409_v7 = vshrl.u32 %v4156_v43, 16  ;;  %3410 = vmatprep.subr.msk.bf16.mxu0 %vm487_vm0, %v4163_v51  ;;  %v2990_v53 = vcombine.low %v1312_v38, %v1322_v37  ;;  %v3004_v46 = vld [vmem:[%s3722_s6 + $0x18] sm:$0xe]  ;;  %v3498_v5 = vld [vmem:[%s3722_s6 + $0x48] sm:$0xff]  }
  0x6e   : > { %v2991_v28 = vcombine.low %v1336_v41, %v1346_v45  ;;  %v1355_v61 = vrot.slane %v1354_v29, 4  ;;  %v1369_v17 = vrot.slane %v1367_v19, 5  ;;  %v1365_v1 = vrot.slane %v1364_v47, 4 }
  0x6f   : > { %3294 = vmatmul.mubr.msk.bf16.vlgmr.msra.gmra.mxu1 %vm462_vm3, %v3494_v52  ;;  %v1393_v13 = vrot.slane %v1391_v55, 5  ;;  %v1398_v49 = vrot.slane %v1396_v56, 4  ;;  %v1401_v40 = vrot.slane %v1399_v32, 5  ;;  %v1379_v2 = vrot.slane %v1378_v15, 4  ;;  %v3499_v56 = vld [vmem:[%s3722_s6 + $0x54] sm:$0xff]  }
  0x70   : > { %3328 = vmatpush3.bf16.msra.mxu1 %v1724_v3  ;;  %3297 = vmatprep.mubr.msk.bf16.mxu1 %vm462_vm3, %v3495_v44  ;;  %v1389_v54 = vrot.slane %v1388_v59, 4  ;;  %v1407_v10 = vrot.slane %v1405_v63, 5  ;;  %v1411_v23 = vrot.slane %v1409_v7, 4  ;;  %v1360_v16 = vsel %vm3763_vm4, %v1355_v61, %v4137_v14  ;;  %v3006_v63 = vld [vmem:[%s3722_s6 + $0x30] sm:$0xe] }
  0x71   : > { %3409 = vmatprep.subr.msk.bf16.mxu1 %vm487_vm0, %v3095_v0  ;;  %v1370_v6 = vsel %vm3763_vm4, %v1365_v1, %v1369_v17  ;;  %v1402_v20 = vor.u32 %v1401_v40, %v1398_v49  ;;  %v1384_v27 = vsel %vm3763_vm4, %v1379_v2, %v1383_v4  ;;  %v1415_v37 = vshll.u32 %v4184_v11, 16  ;;  %v3005_v4 = vld [vmem:[%s3722_s6 + $0x24] sm:$0xe]  ;;  %v3007_v7 = vld [vmem:[%s3722_s6 + $0x3c] sm:$0xe] }
  0x72   : > { %v1394_v31 = vsel %vm3763_vm4, %v1389_v54, %v1393_v13  ;;  %v1412_v38 = vor.u32 %v1411_v23, %v1407_v10  ;;  %v2992_v14 = vcombine.low %v1360_v16, %v1370_v6  ;;  %v1619_v58 = vrot.slane %v3989_v62, 5  ;;  %v3008_v13 = vld [vmem:[%s3722_s6 + $0x48] sm:$0xe]  ;;  %v3071_v49 = vld [vmem:[%s3722_s6 + $0x18] sm:$0xf]  ;;  %v3500_v6 = vld [vmem:[%s3722_s6 + $0x60] sm:$0xff]  }
  0x73   : > { %3316 = vmatmul.mubr.msk.bf16.gmra.mxu0 %vm462_vm3, %v2990_v53  ;;  %v2993_v24 = vcombine.low %v1384_v27, %v1394_v31  ;;  %v1403_v41 = vrot.slane %v1402_v20, 4  ;;  %v1417_v19 = vrot.slane %v1415_v37, 5  ;;  %v1626_v45 = vrot.slane %v4008_v60, 5 }
  0x74   : > { %3319 = vmatprep.mubr.msk.bf16.mxu0 %vm462_vm3, %v2991_v28  ;;  %v1413_v29 = vrot.slane %v1412_v38, 4  ;;  %v1633_v50 = vrot.slane %v4037_v35, 5  ;;  %v3011_v52 = vrot.slane %v3003_v33, 9  ;;  %v1621_v47 = vrot.slane %v1619_v58, 4 }
  0x75   : > { %v1622_v62 = vrot.slane %v3992_v48, 5  ;;  %v3012_v55 = vrot.slane %v3004_v46, 9  ;;  %v1408_v32 = vsel %vm3763_vm4, %v1403_v41, %v1407_v10  ;;  %v1628_v35 = vrot.slane %v1626_v45, 4  ;;  %v4254_v10 = vld [vmem:[%s3722_s6 + $0x1c] sm:$0xf] }
  0x76   : > { %v1418_v60 = vsel %vm3763_vm4, %v1413_v29, %v1417_v19  ;;  %v1629_v44 = vrot.slane %v4031_v22, 5  ;;  %v3013_v15 = vrot.slane %v3005_v4, 9  ;;  %v1635_v59 = vrot.slane %v1633_v50, 4  ;;  %v3074_v29 = vld [vmem:[%s3722_s6 + $0x24] sm:$0xf]  ;;  %v3503_v4 = vld [vmem:[%s3722_s6 + $0x30] sm:$0xff]  }
  0x77   : > { %3298 = vmatmul.mubr.msk.bf16.gmra.mxu1 %vm462_vm3, %v3496_v8  ;;  %v1636_v48 = vrot.slane %v4043_v42, 5  ;;  %v1640_v3 = vrot.slane %v4064_v34, 5  ;;  %v2994_v53 = vcombine.low %v1408_v32, %v1418_v60  ;;  %v1620_v28 = vsel %vm3899_vm7, %v3011_v52, %v1619_v58  ;;  %v3501_v42 = vld [vmem:[%s3722_s6 + $0x18] sm:$0xff]  }
  0x78   : > { %3301 = vmatprep.mubr.msk.bf16.mxu1 %vm462_vm3, %v3497_v26  ;;  %v1623_v22 = vsel %vm3899_vm7, %v1621_v47, %v1622_v62  ;;  %v4229_v61 = vsel %vm487_vm0, %v3095_v0, 0  ;;  %v4235_v34 = vsel %vm3899_vm7, %v3012_v55, %v1626_v45  ;;  %v4239_v17 = vsel %vm3899_vm7, %v1628_v35, %v1629_v44  ;;  %v4298_v55 = vld [vmem:[%s3722_s6 + $0x28] sm:$0xf] }
  0x79   : > { %v2562_v1 = vsel %vm487_vm0, %v4163_v51, 0  ;;  %v4247_v0 = vsel %vm3899_vm7, %v3013_v15, %v1633_v50  ;;  %v4251_v40 = vsel %vm3899_vm7, %v1635_v59, %v1636_v48  ;;  %v3014_v2 = vrot.slane %v3006_v63, 9  ;;  %v3073_v15 = vld [vmem:[%s3722_s6 + $0x20] sm:$0x1] }
  0x7a   : > { %v3015_v54 = vrot.slane %v3007_v7, 9  ;;  %v3020_v23 = vcombine.low %v1620_v28, %v1623_v22  ;;  %v1642_v8 = vrot.slane %v1640_v3, 4  ;;  %v1643_v16 = vrot.slane %v4076_v9, 5 }
  0x7b   : > { %3320 = vmatmul.mubr.msk.bf16.gmra.mxu0 %vm462_vm3, %v2992_v14  ;;  %v1647_v51 = vrot.slane %v4083_v25, 5  ;;  %v3021_v20 = vcombine.low %v4235_v34, %v4239_v17  ;;  %v3016_v26 = vrot.slane %v3008_v13, 9  ;;  %v2066_v27 = vshrl.u32 %v3071_v49, 16  ;;  %v3009_v25 = vld [vmem:[%s3722_s6 + $0x54] sm:$0xe] }
  0x7c   : > { %3323 = vmatprep.mubr.msk.bf16.mxu0 %vm462_vm3, %v2993_v24  ;;  %v2069_v31 = vshll.u32 %v3071_v49, 16  ;;  %v3022_v38 = vcombine.low %v4247_v0, %v4251_v40  ;;  %v1650_v9 = vrot.slane %v4089_v36, 5  ;;  %v2075_v37 = vshll.u32 %v4254_v10, 16  ;;  %v3502_v36 = vld [vmem:[%s3722_s6 + $0x24] sm:$0xff]  }
  0x7d   : > { %v2079_v14 = vshrl.u32 %v4254_v10, 16  ;;  %v4271_v24 = vsel %vm3899_vm7, %v3014_v2, %v1640_v3  ;;  %v4275_v33 = vsel %vm3899_vm7, %v3015_v54, %v1647_v51  ;;  %v1654_v58 = vrot.slane %v4104_v57, 5  ;;  %v3113_v17 = vld [vmem:[%s3722_s6 + $0x24] sm:$0xe] }
  0x7e   : > { %v1661_v41 = vrot.slane %v4128_v12, 5  ;;  %v4283_v19 = vsel %vm3899_vm7, %v1642_v8, %v1643_v16  ;;  %v1649_v46 = vrot.slane %v1647_v51, 4  ;;  %v1657_v45 = vrot.slane %v4131_v18, 5 }
  0x7f   : > { %3302 = vmatmul.mubr.msk.bf16.gmra.mxu1 %vm462_vm3, %v3498_v5  ;;  %v1668_v50 = vrot.slane %v4156_v43, 5  ;;  %v4291_v57 = vsel %vm3899_vm7, %v3016_v26, %v1654_v58  ;;  %v3017_v12 = vrot.slane %v3009_v25, 9  ;;  %v3010_v5 = vld [vmem:[%s3722_s6 + $0x60] sm:$0xe]  ;;  %v2068_v52 = vrot.slane %v2066_v27, 4 }
  0x80   : > { %3305 = vmatprep.mubr.msk.bf16.mxu1 %vm462_vm3, %v3499_v56  ;;  %v2071_v47 = vrot.slane %v2069_v31, 5  ;;  %v4295_v62 = vrot.slane %v2075_v37, 5  ;;  %v2081_v18 = vrot.slane %v2079_v14, 4  ;;  %v2090_v43 = vshrl.u32 %v3074_v29, 16  ;;  %v3077_v26 = vld [vmem:[%s3722_s6 + $0x30] sm:$0xf] }
  0x81   : > { %v2093_v56 = vshll.u32 %v3074_v29, 16  ;;  %v3023_v32 = vcombine.low %v4271_v24, %v4283_v19  ;;  %v1656_v60 = vrot.slane %v1654_v58, 4  ;;  %v1663_v35 = vrot.slane %v1661_v41, 4  ;;  %v4343_v27 = vld [vmem:[%s3722_s6 + $0x34] sm:$0xf]  ;;  %v3504_v31 = vld [vmem:[%s3722_s6 + $0x3c] sm:$0xff]  }
  0x82   : > { %v1664_v44 = vrot.slane %v4146_v39, 5  ;;  %v4306_v59 = vsel %vm3899_vm7, %v1649_v46, %v1650_v9  ;;  %v3018_v48 = vrot.slane %v3010_v5, 9  ;;  %v1670_v63 = vrot.slane %v1668_v50, 4 }
  0x83   : > { %3324 = vmatmul.mubr.msk.bf16.gmra.mxu0 %vm462_vm3, %v2994_v53  ;;  %v1671_v3 = vrot.slane %v4184_v11, 5  ;;  %v2072_v7 = vor.u32 %v2071_v47, %v2068_v52  ;;  %v3112_v53 = vld [vmem:[%s3722_s6 + $0x18] sm:$0xe]  ;;  %v2457_v28 = vrot.slane %v4254_v10, 5  ;;  %v2099_v22 = vshll.u32 %v4298_v55, 16 }
  0x84   : > { %3347 = vmatprep.mubr.msk.bf16.mxu0 %vm462_vm3, %v3501_v42  ;;  %v2103_v39 = vshrl.u32 %v4298_v55, 16  ;;  %v2082_v42 = vor.u32 %v2081_v18, %v4295_v62  ;;  %v2085_v11 = vshll.u32 %v3073_v15, 16  ;;  %v2092_v13 = vrot.slane %v2090_v43, 4  ;;  %v3080_v52 = vld [vmem:[%s3722_s6 + $0x3c] sm:$0xf] }
  0x85   : > { %v2095_v49 = vrot.slane %v2093_v56, 5  ;;  %v3024_v2 = vcombine.low %v4275_v33, %v4306_v59  ;;  %v4320_v54 = vsel %vm3899_vm7, %v1656_v60, %v1657_v45  ;;  %v4324_v10 = vsel %vm3899_vm7, %v3017_v12, %v1661_v41  ;;  %v3505_v33 = vld [vmem:[%s3722_s6 + $0x48] sm:$0xff]   ;;  %v3079_v60 = vld [vmem:[%s3722_s6 + $0x38] sm:$0x1] }
  0x86   : > { %v4335_v8 = vsel %vm3899_vm7, %v3018_v48, %v1668_v50  ;;  %v4339_v16 = vsel %vm3899_vm7, %v1670_v63, %v1671_v3  ;;  %v3120_v51 = vrot.slane %v3112_v53, 9  ;;  %v2073_v9 = vrot.slane %v2072_v7, 4  ;;  %v3114_v48 = vld [vmem:[%s3722_s6 + $0x30] sm:$0xe]  ;;  %v3506_v53 = vld [vmem:[%s3722_s6 + $0x54] sm:$0xff]  }
  0x87   : > { %3306 = vmatmul.mubr.msk.bf16.gmra.mxu1 %vm462_vm3, %v3500_v6  ;;  %v2460_v6 = vrot.slane %v3073_v15, 5  ;;  %v2459_v25 = vrot.slane %v2457_v28, 4  ;;  %v4350_v37 = vrot.slane %v2099_v22, 5  ;;  %v2105_v14 = vrot.slane %v2103_v39, 4 }
  0x88   : > { %3329 = vmatprep.mubr.msk.bf16.mxu1 %vm462_vm3, %v3020_v23  ;;  %v4331_v23 = vld [vmem:[%s3722_s6 + $0x2c] sm:$0x1]  ;;  %v2083_v58 = vrot.slane %v2082_v42, 4  ;;  %v2087_v41 = vrot.slane %v2085_v11, 5  ;;  %v2096_v29 = vor.u32 %v2095_v49, %v2092_v13  ;;  %v2123_v46 = vshll.u32 %v4343_v27, 16  ;;  %v3507_v11 = vld [vmem:[%s3722_s6 + $0x60] sm:$0xff]  }
  0x89   : > { %v2109_v34 = vshll.u32 %v4331_v23, 16  ;;  %v2127_v45 = vshrl.u32 %v4343_v27, 16  ;;  %v3027_v40 = vcombine.low %v4335_v8, %v4339_v16  ;;  %v2078_v50 = vsel %vm3763_vm4, %v2073_v9, %v4295_v62  ;;  %v4387_v62 = vld [vmem:[%s3722_s6 + $0x40] sm:$0xf] }
  0x8a   : > { %v2106_v12 = vor.u32 %v2105_v14, %v4350_v37  ;;  %v2464_v5 = vrot.slane %v4298_v55, 5  ;;  %v2088_v47 = vsel %vm3763_vm4, %v2083_v58, %v2087_v41  ;;  %v2097_v18 = vrot.slane %v2096_v29, 4  ;;  %v3115_v29 = vld [vmem:[%s3722_s6 + $0x3c] sm:$0xe] }
  0x8b   : > { %3348 = vmatmul.mubr.msk.bf16.vlgmr.msra.gmra.mxu0 %vm462_vm3, %v3502_v36  ;;  %v2117_v36 = vshll.u32 %v3077_v26, 16  ;;  %v2111_v43 = vrot.slane %v2109_v34, 5  ;;  %v3121_v56 = vrot.slane %v3113_v17, 9  ;;  %v4390_v15 = vrot.slane %v2123_v46, 5 }
  0x8c   : > { %3382 = vmatpush3.bf16.msra.mxu0 %v2562_v1  ;;  %3351 = vmatprep.mubr.msk.bf16.mxu0 %vm462_vm3, %v3503_v4  ;;  %v4328_v1 = vsel %vm3899_vm7, %v1663_v35, %v1664_v44  ;;  %v4378_v4 = vsel %vm3899_vm7, %v2459_v25, %v2460_v6  ;;  %v2129_v59 = vrot.slane %v2127_v45, 4  ;;  %v2467_v55 = vrot.slane %v4331_v23, 5  ;;  %v3083_v6 = vld [vmem:[%s3722_s6 + $0x48] sm:$0xf] }
  0x8d   : > { %v3026_v0 = vcombine.low %v4324_v10, %v4328_v1  ;;  %v2119_v44 = vrot.slane %v2117_v36, 5  ;;  %v2471_v63 = vrot.slane %v4343_v27, 5  ;;  %v2138_v3 = vshrl.u32 %v3080_v52, 16 }
  0x8e   : > { %v2141_v7 = vshll.u32 %v3080_v52, 16  ;;  %v2466_v22 = vrot.slane %v2464_v5, 4  ;;  %v2147_v39 = vshll.u32 %v4387_v62, 16  ;;  %v2151_v42 = vshrl.u32 %v4387_v62, 16 }
  0x8f   : > { %3330 = vmatmul.mubr.msk.bf16.vlgmr.msra.gmra.mxu1 %vm462_vm3, %v3021_v20  ;;  %v2114_v20 = vshrl.u32 %v3077_v26, 16  ;;  %v4404_v13 = vcombine.low %v2078_v50, %v2088_v47  ;;  %v2102_v24 = vsel %vm3763_vm4, %v2097_v18, %v4350_v37  ;;  %v4413_v19 = vsel %vm3899_vm7, %v3121_v56, %v2464_v5  ;;  %v4418_v26 = vld [vmem:[%s3722_s6 + $0x4c] sm:$0xf] }
  0x90   : > { %3364 = vmatpush3.bf16.msra.mxu1 %v4229_v61  ;;  %3333 = vmatprep.mubr.msk.bf16.mxu1 %vm462_vm3, %v3022_v38  ;;  %v3025_v61 = vcombine.low %v4291_v57, %v4320_v54  ;;  %v4370_v38 = vsel %vm3899_vm7, %v3120_v51, %v2457_v28  ;;  %v2107_v28 = vrot.slane %v2106_v12, 4  ;;  %v2130_v23 = vor.u32 %v2129_v59, %v4390_v15  ;;  %v3508_v47 = vld [vmem:[%s3722_s6 + $0x6c] sm:$0xff]  }
  0x91   : > { %v2116_v35 = vrot.slane %v2114_v20, 4  ;;  %v3129_v49 = vcombine.low %v4370_v38, %v4378_v4  ;;  %v3122_v51 = vrot.slane %v3114_v48, 9  ;;  %v2473_v27 = vrot.slane %v2471_v63, 4 }
  0x92   : > { %v2140_v9 = vrot.slane %v2138_v3, 4  ;;  %v2143_v25 = vrot.slane %v2141_v7, 5  ;;  %v2112_v37 = vsel %vm3763_vm4, %v2107_v28, %v2111_v43  ;;  %v4425_v14 = vsel %vm3899_vm7, %v2466_v22, %v2467_v55  ;;  %v3086_v55 = vld [vmem:[%s3722_s6 + $0x54] sm:$0xf] }
  0x93   : > { %3352 = vmatmul.mubr.msk.bf16.gmra.mxu0 %vm462_vm3, %v3504_v31  ;;  %v2474_v31 = vrot.slane %v3079_v60, 5  ;;  %v4428_v58 = vrot.slane %v2147_v39, 5  ;;  %v2153_v41 = vrot.slane %v2151_v42, 4  ;;  %v2162_v34 = vshrl.u32 %v3083_v6, 16  ;;  %v3089_v42 = vld [vmem:[%s3722_s6 + $0x60] sm:$0xf] }
  0x94   : > { %3355 = vmatprep.mubr.msk.bf16.mxu0 %vm462_vm3, %v3505_v33  ;;  %v3082_v33 = vld [vmem:[%s3722_s6 + $0x44] sm:$0x1]  ;;  %v2165_v17 = vshll.u32 %v3083_v6, 16  ;;  %v2171_v20 = vshll.u32 %v4418_v26, 16  ;;  %v2175_v36 = vshrl.u32 %v4418_v26, 16  ;;  %v4436_v45 = vrot.slane %v2130_v23, 4 }
  0x95   : > { %v4442_v50 = vsel %vm3899_vm7, %v3122_v51, %v2471_v63  ;;  %v4446_v4 = vsel %vm3899_vm7, %v2473_v27, %v2474_v31  ;;  %v2144_v12 = vor.u32 %v2143_v25, %v2140_v9  ;;  %v2157_v5 = vshll.u32 %v3082_v33, 16  ;;  %v4491_v23 = vld [vmem:[%s3722_s6 + $0x64] sm:$0xf] }
  0x96   : > { %v2478_v52 = vrot.slane %v4387_v62, 5  ;;  %v4454_v18 = vcombine.low %v2102_v24, %v2112_v37  ;;  %v3130_v43 = vcombine.low %v4413_v19, %v4425_v14  ;;  %v2154_v56 = vor.u32 %v2153_v41, %v4428_v58 }
  0x97   : > { %3334 = vmatmul.mubr.msk.bf16.gmra.mxu1 %vm462_vm3, %v3023_v32  ;;  %v2120_v32 = vor.u32 %v2119_v44, %v2116_v35  ;;  %v3085_v35 = vld [vmem:[%s3722_s6 + $0x50] sm:$0x1]  ;;  %v2164_v57 = vrot.slane %v2162_v34, 4  ;;  %v2167_v54 = vrot.slane %v2165_v17, 5  ;;  %v2177_v62 = vrot.slane %v2175_v36, 4 }
  0x98   : > { %3337 = vmatprep.mubr.msk.bf16.mxu1 %vm462_vm3, %v3024_v2  ;;  %v2133_v2 = vshll.u32 %v3079_v60, 16  ;;  %v3123_v60 = vrot.slane %v3115_v29, 9  ;;  %v3116_v44 = vld [vmem:[%s3722_s6 + $0x48] sm:$0xe]  ;;  %v3131_v1 = vcombine.low %v4442_v50, %v4446_v4  ;;  %v2145_v48 = vrot.slane %v2144_v12, 4 }
  0x99   : > { %v4434_v46 = vrot.slane %v2120_v32, 4  ;;  %v2159_v63 = vrot.slane %v2157_v5, 5  ;;  %v2480_v3 = vrot.slane %v2478_v52, 4  ;;  %v2481_v7 = vrot.slane %v3082_v33, 5  ;;  %v3088_v29 = vld [vmem:[%s3722_s6 + $0x5c] sm:$0x1] }
  0x9a   : > { %v4438_v38 = vrot.slane %v2133_v2, 5  ;;  %v4485_v28 = vsel %vm3899_vm7, %v3123_v60, %v2478_v52  ;;  %v2181_v22 = vshll.u32 %v3085_v35, 16  ;;  %v3124_v39 = vrot.slane %v3116_v44, 9  ;;  %v3091_v12 = vld [vmem:[%s3722_s6 + $0x68] sm:$0x1] }
  0x9b   : > { %3356 = vmatmul.mubr.msk.bf16.gmra.mxu0 %vm462_vm3, %v3506_v53  ;;  %v2126_v59 = vsel %vm3763_vm4, %v4434_v46, %v4390_v15  ;;  %v4480_v53 = vld [vmem:[%s3722_s6 + $0x58] sm:$0xf]  ;;  %v2155_v15 = vrot.slane %v2154_v56, 4  ;;  %v2488_v19 = vrot.slane %v3085_v35, 5  ;;  %v2186_v32 = vshrl.u32 %v3086_v55, 16 }
  0x9c   : > { %3359 = vmatprep.mubr.msk.bf16.mxu0 %vm462_vm3, %v3507_v11  ;;  %v2136_v10 = vsel %vm3763_vm4, %v4436_v45, %v4438_v38  ;;  %v2168_v11 = vor.u32 %v2167_v54, %v2164_v57  ;;  %v2189_v51 = vshll.u32 %v3086_v55, 16  ;;  %v2195_v6 = vshll.u32 %v4480_v53, 16  ;;  %v3117_v46 = vld [vmem:[%s3722_s6 + $0x54] sm:$0xe]  ;;  %v3092_v57 = vld [vmem:[%s3722_s6 + $0x6c] sm:$0xf] }
  0x9d   : > { %v2150_v27 = vsel %vm3763_vm4, %v2145_v48, %v4428_v58  ;;  %v2210_v31 = vshrl.u32 %v3089_v42, 16  ;;  %v2213_v9 = vshll.u32 %v3089_v42, 16  ;;  %v2160_v25 = vsel %vm3763_vm4, %v2155_v15, %v2159_v63 }
  0x9e   : > { %v2183_v37 = vrot.slane %v2181_v22, 5  ;;  %v2219_v14 = vshll.u32 %v4491_v23, 16  ;;  %v2223_v33 = vshrl.u32 %v4491_v23, 16  ;;  %v2169_v58 = vrot.slane %v2168_v11, 4 }
  0x9f   : > { %3338 = vmatmul.mubr.msk.bf16.gmra.mxu1 %vm462_vm3, %v3025_v61  ;;  %v4464_v61 = vrot.slane %v2171_v20, 5  ;;  %v2188_v16 = vrot.slane %v2186_v32, 4  ;;  %v2191_v34 = vrot.slane %v2189_v51, 5  ;;  %v4517_v17 = vrot.slane %v2195_v6, 5  ;;  %v3094_v6 = vld [vmem:[%s3722_s6 + $0x74] sm:$0x1] }
  0xa0   : > { %3341 = vmatprep.mubr.msk.bf16.mxu1 %vm462_vm3, %v3026_v0  ;;  %v2485_v0 = vrot.slane %v4418_v26, 5  ;;  %v2199_v26 = vshrl.u32 %v4480_v53, 16  ;;  %v3098_v36 = vcombine.low %v2126_v59, %v2136_v10  ;;  %v2212_v45 = vrot.slane %v2210_v31, 4  ;;  %v3093_v10 = vld [vmem:[%s3722_s6 + $0x70] sm:$0xf] }
  0xa1   : > { %v2178_v24 = vor.u32 %v2177_v62, %v4464_v61  ;;  %v2215_v38 = vrot.slane %v2213_v9, 5  ;;  %v3099_v50 = vcombine.low %v2150_v27, %v2160_v25  ;;  %v4525_v5 = vrot.slane %v2219_v14, 5  ;;  %v3119_v25 = vld [vmem:[%s3722_s6 + $0x6c] sm:$0xe] }
  0xa2   : > { %v2487_v2 = vrot.slane %v2485_v0, 4  ;;  %v2486_v8 = vsel %vm3899_vm7, %v3124_v39, %v2485_v0  ;;  %v2201_v20 = vrot.slane %v2199_v26, 4  ;;  %v2225_v52 = vrot.slane %v2223_v33, 4 }
  0xa3   : > { %3360 = vmatmul.mubr.msk.bf16.gmra.mxu0 %vm462_vm3, %v3508_v47  ;;  %v2179_v41 = vrot.slane %v2178_v24, 4  ;;  %v2174_v47 = vsel %vm3763_vm4, %v2169_v58, %v4464_v61  ;;  %v2499_v35 = vrot.slane %v4491_v23, 5  ;;  %v2192_v54 = vor.u32 %v2191_v34, %v2188_v16 }
  0xa4   : > { %3383 = vmatprep.mubr.msk.bf16.mxu0 %vm462_vm3, %v3129_v49  ;;  %v4500_v49 = vsel %vm3899_vm7, %v2480_v3, %v2481_v7  ;;  %v2202_v62 = vor.u32 %v2201_v20, %v4517_v17  ;;  %v2205_v44 = vshll.u32 %v3088_v29, 16  ;;  %v3125_v59 = vrot.slane %v3117_v46, 9 }
  0xa5   : > { %v3132_v4 = vcombine.low %v4485_v28, %v4500_v49  ;;  %v2184_v56 = vsel %vm3763_vm4, %v2179_v41, %v2183_v37  ;;  %v2216_v55 = vor.u32 %v2215_v38, %v2212_v45  ;;  %v2229_v48 = vshll.u32 %v3091_v12, 16 }
  0xa6   : > { %v2226_v61 = vor.u32 %v2225_v52, %v4525_v5  ;;  %v2234_v3 = vshrl.u32 %v3092_v57, 16  ;;  %v2237_v7 = vshll.u32 %v3092_v57, 16  ;;  %v2502_v15 = vrot.slane %v3091_v12, 5 }
  0xa7   : > { %3342 = vmatmul.mubr.msk.bf16.gmra.mxu1 %vm462_vm3, %v3027_v40  ;;  %v2489_v40 = vsel %vm3899_vm7, %v2487_v2, %v2488_v19  ;;  %v2243_v28 = vshll.u32 %v3093_v10, 16  ;;  %v2247_v22 = vshrl.u32 %v3093_v10, 16  ;;  %v3100_v39 = vcombine.low %v2174_v47, %v2184_v56 }
  0xa8   : > { %3365 = vmatprep.mubr.msk.bf16.mxu1 %vm462_vm3, %v4404_v13  ;;  %v2492_v13 = vrot.slane %v4480_v53, 5  ;;  %v3133_v60 = vcombine.low %v2486_v8, %v2489_v40  ;;  %v2501_v53 = vrot.slane %v2499_v35, 4  ;;  %v2193_v42 = vrot.slane %v2192_v54, 4 }
  0xa9   : > { %v2203_v11 = vrot.slane %v2202_v62, 4  ;;  %v2207_v24 = vrot.slane %v2205_v44, 5  ;;  %v2217_v32 = vrot.slane %v2216_v55, 4  ;;  %v2231_v23 = vrot.slane %v2229_v48, 5 }
  0xaa   : > { %v2494_v0 = vrot.slane %v2492_v13, 4  ;;  %v2227_v2 = vrot.slane %v2226_v61, 4  ;;  %v2236_v26 = vrot.slane %v2234_v3, 4  ;;  %v2239_v27 = vrot.slane %v2237_v7, 5 }
  0xab   : > { %3384 = vmatmul.mubr.msk.bf16.vlgmr.msra.gmra.mxu0 %vm462_vm3, %v3130_v43  ;;  %v3118_v43 = vld [vmem:[%s3722_s6 + $0x60] sm:$0xe]  ;;  %v2503_v49 = vsel %vm3899_vm7, %v2501_v53, %v2502_v15  ;;  %v2245_v31 = vrot.slane %v2243_v28, 5  ;;  %v2249_v9 = vrot.slane %v2247_v22, 4  ;;  %v2506_v37 = vrot.slane %v3093_v10, 5  ;;  %s202_s6 = sand.u32 1, %s3577_s16  }
  0xac   : > { %3387 = vmatprep.mubr.msk.bf16.mxu0 %vm462_vm3, %v3131_v1  ;;  %v2495_v1 = vrot.slane %v3088_v29, 5  ;;  %v3126_v63 = vrot.slane %v3118_v43, 9  ;;  %v2198_v14 = vsel %vm3763_vm4, %v2193_v42, %v4517_v17  ;;  %v2208_v33 = vsel %vm3763_vm4, %v2203_v11, %v2207_v24  ;;  %s2864_s12 = sshll.u32 %s202_s6, 7  ;;  %s4872_s8 = scalar_lea.sflag [#allocation3], %s202_s6 }
  0xad   : > { %v2222_v41 = vsel %vm3763_vm4, %v2217_v32, %v4525_v5  ;;  %v2232_v8 = vsel %vm3763_vm4, %v2227_v2, %v2231_v23  ;;  %v2253_v40 = vshll.u32 %v3094_v6, 16  ;;  %v3127_v29 = vrot.slane %v3119_v25, 9  ;;  %s4775_s13 = scalar_lea.vmem [#allocation2], %s2864_s12  ;;  %s3515_s12 = scalar_lea.vmem %s3514_s11, 4096 }
  0xae   : > { %v2496_v19 = vsel %vm3899_vm7, %v2494_v0, %v2495_v1  ;;  %v2500_v51 = vsel %vm3899_vm7, %v3126_v63, %v2499_v35  ;;  %v2240_v34 = vor.u32 %v2239_v27, %v2236_v26  ;;  %v2250_v17 = vor.u32 %v2249_v9, %v2245_v31  ;;  %s2773_s19 = sshll.u32 %s4775_s13, 4  ;;  %s4864_s19 = int_to_ptr.vmem [resolvable:$true] %s2773_s19 }
  0xaf   : > { %3366 = vmatmul.mubr.msk.bf16.vlgmr.msra.gmra.mxu1 %vm462_vm3, %v4454_v18  ;;  %v2493_v18 = vsel %vm3899_vm7, %v3125_v59, %v2492_v13  ;;  %v3135_v16 = vcombine.low %v2500_v51, %v2503_v49  ;;  %v2508_v20 = vrot.slane %v2506_v37, 4  ;;  %v3101_v46 = vcombine.low %v2198_v14, %v2208_v33  ;;  %s3509_s9 = scalar_lea.vmem %s4864_s19, 2048  ;;  %p3516_p2 = scmp.lt.s32.totalorder %s4864_s19, %s3514_s11 }
  0xb0   : > { %3369 = vmatprep.mubr.msk.bf16.mxu1 %vm462_vm3, %v3098_v36  ;;  %v3134_v58 = vcombine.low %v2493_v18, %v2496_v19  ;;  %v2509_v36 = vrot.slane %v3094_v6, 5  ;;  %v3102_v13 = vcombine.low %v2222_v41, %v2232_v8  ;;  %v2255_v45 = vrot.slane %v2253_v40, 5  ;;  %p3510_p13 = scmp.ne.s32.totalorder %s4864_s19, %s3509_s9  ;;  %p3517_p4 = scmp.lt.s32.totalorder %s3515_s12, %s3509_s9 }
  0xb1   : > { %v2241_v38 = vrot.slane %v2240_v34, 4 }
  0xb2   : > { %v2510_v12 = vsel %vm3899_vm7, %v2508_v20, %v2509_v36  ;;  %p3511_p0 = pnand %p3510_p13, %p3682_p3  ;;  %p3518_p5 = por %p3517_p4, %p3516_p2 }
  0xb3   : > { %3388 = vmatmul.mubr.msk.bf16.gmra.mxu0 %vm462_vm3, %v3132_v4  ;;  %v2507_v4 = vsel %vm3899_vm7, %v3127_v29, %v2506_v37  ;;  %v2246_v52 = vsel %vm3763_vm4, %v2241_v38, %v2245_v31 }
  0xb4   : > { %3391 = vmatprep.mubr.msk.bf16.mxu0 %vm462_vm3, %v3133_v60  ;;  %v3136_v5 = vcombine.low %v2507_v4, %v2510_v12  ;;  %p3512_p1 = pneg %p3511_p0 }
  0xb6   : > { %p3519_p6 = pnand %p3518_p5, %p3512_p1 }
  0xb7   : > { %3370 = vmatmul.mubr.msk.bf16.gmra.mxu1 %vm462_vm3, %v3099_v50  ;;  %v2251_v50 = vrot.slane %v2250_v17, 4 }
  0xb8   : > { %3373 = vmatprep.mubr.msk.bf16.mxu1 %vm462_vm3, %v3100_v39 }
  0xb9   : > { %v2256_v47 = vsel %vm3763_vm4, %v2251_v50, %v2255_v45 }
  0xba   : > { %v3103_v56 = vcombine.low %v2246_v52, %v2256_v47 }
  0xbb   : > { %3392 = vmatmul.mubr.msk.bf16.gmra.mxu0 %vm462_vm3, %v3134_v58 }
  0xbc   : > { %3395 = vmatprep.mubr.msk.bf16.mxu0 %vm462_vm3, %v3135_v16 }
  0xbf   : > { %3374 = vmatmul.mubr.msk.bf16.gmra.mxu1 %vm462_vm3, %v3101_v46 }
  0xc0   : > { %3377 = vmatprep.mubr.msk.bf16.mxu1 %vm462_vm3, %v3102_v13 }
  0xc3   : > { %3396 = vmatmul.mubr.msk.bf16.gmra.mxu0 %vm462_vm3, %v3136_v5 }
  0xc7   : > { %3378 = vmatmul.mubr.msk.bf16.gmra.mxu1 %vm462_vm3, %v3103_v56 }
  0xf2   : > { %v3241_v60 = vpop.f32.mrf.mxu0 }
  0xf4   : > { %v525_v21 = vpop.f32.mrf.mxu0 }
  0xf6   : > { %v3242_v57 = vpop.f32.mrf.mxu0 }
  0xf7   : > { %v3249_v43 = vpop.f32.mrf.mxu1 }
  0xf8   : > { %v528_v62 = vpop.f32.mrf.mxu0 }
  0xf9   : > { %v557_v35 = vpop.f32.mrf.mxu1 }
  0xfb   : > { %v3250_v54 = vpop.f32.mrf.mxu1 }
  0xfd   : > { %v560_v44 = vpop.f32.mrf.mxu1 }
 0x103   : > { %v3245_v59 = vpop.f32.mrf.mxu0 }
 0x105   : > { %v541_v10 = vpop.f32.mrf.mxu0 }
 0x107   : > { %v3253_v0 = vpop.f32.mrf.mxu1  ;;  %v3246_v1 = vpop.f32.mrf.mxu0 }
 0x109   : > { %v573_v55 = vpop.f32.mrf.mxu1  ;;  %v544_v30 = vpop.f32.mrf.mxu0 }
 0x10b   : > { %v3254_v48 = vpop.f32.mrf.mxu1  ;;  %v3277_v61 = vpop.f32.mrf.mxu0 }
 0x10d   : > { %v4580_v63 = vpop.f32.mrf.mxu1  ;;  %v922_v3 = vpop.f32.mrf.mxu0 }
 0x10f   : > { %v3259_v7 = vpop.f32.mrf.mxu1  ;;  %v3278_v53 = vpop.f32.mrf.mxu0 }
 0x110   : > { %v698_v15 = vadd.f32 %v3259_v7, %v3241_v60 }
 0x111   : > { %v689_v28 = vpop.f32.mrf.mxu1  ;;  %v925_v22 = vpop.f32.mrf.mxu0 }
 0x112   : > { %v4582_v39 = vadd.f32 %v3277_v61, %v698_v15  ;;  %v690_v42 = vadd.f32 %v689_v28, %v525_v21 }
 0x113   : > { %v3260_v11 = vpop.f32.mrf.mxu1  ;;  %v3281_v24 = vpop.f32.mrf.mxu0 }
 0x114   : > { %v4584_v18 = vadd.f32 %v922_v3, %v690_v42  ;;  %v701_v19 = vadd.f32 %v3260_v11, %v3242_v57 }
 0x115   : > { %v692_v32 = vpop.f32.mrf.mxu1  ;;  %v938_v23 = vpop.f32.mrf.mxu0 }
 0x116   : > { %v4586_v2 = vadd.f32 %v3278_v53, %v701_v19  ;;  %v693_v51 = vadd.f32 %v692_v32, %v528_v62 }
 0x117   : > { %v3263_v6 = vpop.f32.mrf.mxu1  ;;  %v3282_v26 = vpop.f32.mrf.mxu0 }
 0x118   : > { %v4588_v27 = vadd.f32 %v925_v22, %v693_v51  ;;  %v714_v49 = vadd.f32 %v3263_v6, %v3245_v59 }
 0x119   : > { %v705_v31 = vpop.f32.mrf.mxu1  ;;  %v941_v9 = vpop.f32.mrf.mxu0 }
 0x11a   : > { %v4590_v25 = vadd.f32 %v3281_v24, %v714_v49  ;;  %v706_v37 = vadd.f32 %v705_v31, %v541_v10 }
 0x11b   : > { %v3264_v14 = vpop.f32.mrf.mxu1  ;;  %v3285_v33 = vpop.f32.mrf.mxu0 }
 0x11c   : > { %v4592_v58 = vadd.f32 %v938_v23, %v706_v37  ;;  %v717_v41 = vadd.f32 %v3264_v14, %v3246_v1 }
 0x11d   : > { %v708_v8 = vpop.f32.mrf.mxu1  ;;  %v954_v16 = vpop.f32.mrf.mxu0 }
 0x11e   : > { %v4594_v40 = vadd.f32 %v3282_v26, %v717_v41  ;;  %v709_v29 = vadd.f32 %v708_v8, %v544_v30 }
 0x11f   : > { %v3267_v34 = vpop.f32.mrf.mxu1  ;;  %v3286_v17 = vpop.f32.mrf.mxu0 }
 0x120   : > { %v4596_v20 = vadd.f32 %v941_v9, %v709_v29  ;;  %v730_v36 = vadd.f32 %v3267_v34, %v3249_v43 }
 0x121   : > { %v721_v46 = vpop.f32.mrf.mxu1  ;;  %v957_v13 = vpop.f32.mrf.mxu0 }
 0x122   : > { %v4598_v45 = vadd.f32 %v3285_v33, %v730_v36  ;;  %v722_v38 = vadd.f32 %v721_v46, %v557_v35 }
 0x123   : > { %v3268_v50 = vpop.f32.mrf.mxu1  ;;  %v3289_v4 = vpop.f32.mrf.mxu0 }
 0x124   : > { %v4600_v12 = vadd.f32 %v954_v16, %v722_v38  ;;  %v733_v5 = vadd.f32 %v3268_v50, %v3250_v54 }
 0x125   : > { %v724_v52 = vpop.f32.mrf.mxu1  ;;  %v970_v47 = vpop.f32.mrf.mxu0 }
 0x126   : > { %v4602_v56 = vadd.f32 %v3286_v17, %v733_v5  ;;  %v725_v60 = vadd.f32 %v724_v52, %v560_v44 }
 0x127   : > { %v3271_v21 = vpop.f32.mrf.mxu1  ;;  %v3290_v57 = vpop.f32.mrf.mxu0 }
 0x128   : > { %v4604_v62 = vadd.f32 %v957_v13, %v725_v60  ;;  %v746_v43 = vadd.f32 %v3271_v21, %v3253_v0 }
 0x129   : > { %v737_v59 = vpop.f32.mrf.mxu1  ;;  %v973_v10 = vpop.f32.mrf.mxu0 }
 0x12a   : > { %v4606_v1 = vadd.f32 %v3289_v4, %v746_v43  ;;  %v738_v35 = vadd.f32 %v737_v59, %v573_v55 }
 0x12b   : > { %v3272_v30 = vpop.f32.mrf.mxu1  ;;  %v4608_v61 = vpop.f32.mrf.mxu0 }
 0x12c   : > { %v4610_v3 = vadd.f32 %v970_v47, %v738_v35  ;;  %v749_v54 = vadd.f32 %v3272_v30, %v3254_v48 }
 0x12d   : > { %v740_v7 = vpop.f32.mrf.mxu1  ;;  %v4612_v53 = vpop.f32.mrf.mxu0 }
 0x12e   : > { %v4614_v44 = vadd.f32 %v3290_v57, %v749_v54  ;;  %v741_v15 = vadd.f32 %v740_v7, %v4580_v63 }
 0x12f   : > { %v3295_v28 = vpop.f32.mrf.mxu1  ;;  %v4617_v0 = vpop.f32.mrf.mxu0 }
 0x130   : > { %4934 = vst [vmem:[#allocation5_spill] sm:$0xff] %v4614_v44  ;;  %v4619_v22 = vadd.f32 %v973_v10, %v741_v15 }
 0x131   : > { %v1124_v42 = vpop.f32.mrf.mxu1  ;;  %v4621_v55 = vpop.f32.mrf.mxu0 }
 0x132   : > { %4935 = vst [vmem:[#allocation6_spill] sm:$0xff] %v4619_v22 }
 0x133   : > { %v3296_v11 = vpop.f32.mrf.mxu1  ;;  %v4623_v24 = vpop.f32.mrf.mxu0 }
 0x135   : > { %v1127_v19 = vpop.f32.mrf.mxu1  ;;  %v4625_v48 = vpop.f32.mrf.mxu0 }
 0x137   : > { %v4627_v32 = vpop.f32.mrf.mxu1  ;;  %v4629_v23 = vpop.f32.mrf.mxu0 }
 0x139   : > { %v1140_v51 = vpop.f32.mrf.mxu1  ;;  %v4631_v63 = vpop.f32.mrf.mxu0 }
 0x13b   : > { %v3300_v6 = vpop.f32.mrf.mxu1  ;;  %v4633_v26 = vpop.f32.mrf.mxu0 }
 0x13d   : > { %v4635_v49 = vpop.f32.mrf.mxu1  ;;  %v4637_v31 = vpop.f32.mrf.mxu0 }
 0x13f   : > { %v4639_v9 = vpop.f32.mrf.mxu1  ;;  %v4641_v37 = vpop.f32.mrf.mxu0 }
 0x141   : > { %v4643_v14 = vpop.f32.mrf.mxu1  ;;  %v4645_v33 = vpop.f32.mrf.mxu0 }
 0x142   : > { %4936 = vst [vmem:[#allocation7_spill] sm:$0xff] %v4645_v33 }
 0x143   : > { %v4647_v41 = vpop.f32.mrf.mxu1  ;;  %v4649_v8 = vpop.f32.mrf.mxu0 }
 0x144   : > { %4937 = vst [vmem:[#allocation8_spill] sm:$0xff] %v4649_v8 }
 0x145   : > { %v4651_v16 = vpop.f32.mrf.mxu1  ;;  %v4653_v29 = vpop.f32.mrf.mxu0 }
 0x146   : > { %4938 = vst [vmem:[#allocation9_spill] sm:$0xff] %v4653_v29 }
 0x147   : > { %v4655_v34 = vpop.f32.mrf.mxu1  ;;  %v4657_v17 = vpop.f32.mrf.mxu0 }
 0x148   : > { %4939 = vst [vmem:[#allocation10_spill] sm:$0xff] %v4657_v17 }
 0x149   : > { %v4659_v36 = vpop.f32.mrf.mxu1  ;;  %v4661_v46 = vpop.f32.mrf.mxu0 }
 0x14a   : > { %4940 = vst [vmem:[#allocation11_spill] sm:$0xff] %v4661_v46 }
 0x14b   : > { %v4663_v13 = vpop.f32.mrf.mxu1  ;;  %v3349_v38 = vpop.f32.mrf.mxu0 }
 0x14c   : > { %4941 = vst [vmem:[#allocation12_spill] sm:$0xff] %v4663_v13 }
 0x14d   : > { %v4665_v50 = vpop.f32.mrf.mxu1  ;;  %v1962_v4 = vpop.f32.mrf.mxu0 }
 0x14e   : > { %4942 = vst [vmem:[#allocation13_spill] sm:$0xff] %v4665_v50 }
 0x14f   : > { %v3331_v5 = vpop.f32.mrf.mxu1  ;;  %v4667_v52 = vpop.f32.mrf.mxu0 }
 0x151   : > { %v1760_v47 = vpop.f32.mrf.mxu1  ;;  %v4669_v60 = vpop.f32.mrf.mxu0 }
 0x153   : > { %v3332_v21 = vpop.f32.mrf.mxu1  ;;  %v4671_v57 = vpop.f32.mrf.mxu0 }
 0x155   : > { %v1763_v43 = vpop.f32.mrf.mxu1  ;;  %v4673_v59 = vpop.f32.mrf.mxu0 }
 0x157   : > { %v3335_v10 = vpop.f32.mrf.mxu1  ;;  %v4675_v35 = vpop.f32.mrf.mxu0 }
 0x158   : > { %4943 = vst [vmem:[#allocation14_spill] sm:$0xff] %v4675_v35 }
 0x159   : > { %v1776_v30 = vpop.f32.mrf.mxu1  ;;  %v4677_v54 = vpop.f32.mrf.mxu0 }
 0x15a   : > { %4944 = vst [vmem:[#allocation15_spill] sm:$0xff] %v4677_v54  ;;  %v1189_v54 = vadd.f32 %v3295_v28, %v4582_v39  ;;  %v1188_v28 = vadd.f32 %v1127_v19, %v4588_v27  ;;  %v1192_v27 = vadd.f32 %v4635_v49, %v4596_v20  ;;  %v1198_v49 = vadd.f32 %v4647_v41, %v4602_v56 }
 0x15b   : > { %v4679_v7 = vpop.f32.mrf.mxu1  ;;  %v4681_v15 = vpop.f32.mrf.mxu0 }
 0x15c   : > { %4945 = vst [vmem:[#allocation16_spill] sm:$0xff] %v4681_v15 }
 0x15d   : > { %v4683_v46 = vpop.f32.mrf.mxu1  ;;  %v4685_v17 = vpop.f32.mrf.mxu0 }
 0x15e   : > { %4946 = vst [vmem:[#allocation17_spill] sm:$0xff] %v4685_v17  ;;  %v1187_v17 = vadd.f32 %v1124_v42, %v4584_v18 }
 0x15f   : > { %v4687_v50 = vpop.f32.mrf.mxu1  ;;  %v4689_v22 = vpop.f32.mrf.mxu0 }
 0x160   : > { %4947 = vst [vmem:[#allocation18_spill] sm:$0xff] %v4687_v50  ;;  %4948 = vst [vmem:[#allocation19_spill] sm:$0xff] %v4689_v22  ;;  %v1571_v22 = vadd.f32 %v4608_v61, %v1189_v54  ;;  %v1569_v39 = vadd.f32 %v4612_v53, %v1187_v17  ;;  %v1193_v61 = vadd.f32 %v4627_v32, %v4590_v25  ;;  %v4751_v17 = vld [vmem:[%s4926_s3] ss:$0 sm:$0xff] }
 0x161   : > { %v4691_v13 = vpop.f32.mrf.mxu1  ;;  %v4693_v44 = vpop.f32.mrf.mxu0  ;;  %v1570_v53 = vadd.f32 %v4621_v55, %v1188_v28  ;;  %v1195_v25 = vadd.f32 %v4643_v14, %v4600_v12  ;;  %v1574_v14 = vadd.f32 %v4631_v63, %v1192_v27  ;;  %v4957_v27 = vld [vmem:[#allocation14_spill] sm:$0xff] }
 0x162   : > { %4949 = vst [vmem:[#allocation20_spill] sm:$0xff] %v4691_v13  ;;  %4950 = vst [vmem:[#allocation21_spill] sm:$0xff] %v4693_v44  ;;  %v1190_v44 = vadd.f32 %v3296_v11, %v4586_v2  ;;  %v1191_v2 = vadd.f32 %v1140_v51, %v4592_v58  ;;  %v1194_v11 = vadd.f32 %v3300_v6, %v4594_v40 }
 0x163   : > { %v4695_v29 = vpop.f32.mrf.mxu1  ;;  %v4697_v8 = vpop.f32.mrf.mxu0  ;;  %v1824_v32 = vadd.f32 %v1763_v43, %v1570_v53  ;;  %v1575_v55 = vadd.f32 %v4623_v24, %v1193_v61 }
 0x164   : > { %4951 = vst [vmem:[#allocation22_spill] sm:$0xff] %v4695_v29  ;;  %4952 = vst [vmem:[#allocation23_spill] sm:$0xff] %v4697_v8  ;;  %v1825_v8 = vadd.f32 %v3331_v5, %v1571_v22  ;;  %v1572_v42 = vadd.f32 %v4617_v0, %v1190_v44  ;;  %v1197_v44 = vadd.f32 %v4639_v9, %v4598_v45  ;;  %v4742_v45 = vld [vmem:[%s4925_s2] ss:$0 sm:$0xff] }
 0x165   : > { %v4700_v35 = vpop.f32.mrf.mxu1  ;;  %v4702_v15 = vpop.f32.mrf.mxu0  ;;  %v1573_v6 = vadd.f32 %v4625_v48, %v1191_v2  ;;  %v1576_v20 = vadd.f32 %v4629_v23, %v1194_v11  ;;  %v1829_v56 = vadd.f32 %v3335_v10, %v1575_v55  ;;  %v2026_v5 = vadd.f32 %v4669_v60, %v1824_v32  ;;  %v4956_v11 = vld [vmem:[#allocation7_spill] sm:$0xff]  ;;  %v4960_v32 = vld [vmem:[#allocation9_spill] sm:$0xff] }
 0x166   : > { %4953 = vst [vmem:[#allocation24_spill] sm:$0xff] %v4702_v15  ;;  %v2027_v22 = vadd.f32 %v3349_v38, %v1825_v8  ;;  %v1826_v19 = vadd.f32 %v3332_v21, %v1572_v42  ;;  %v1579_v23 = vadd.f32 %v4633_v26, %v1197_v44  ;;  %v1577_v8 = vadd.f32 %v4637_v31, %v1195_v25  ;;  %v4961_v55 = vld [vmem:[#allocation15_spill] sm:$0xff] }
 0x167   : > { %v4705_v33 = vpop.f32.mrf.mxu1  ;;  %v4707_v50 = vpop.f32.mrf.mxu0  ;;  %v1827_v41 = vadd.f32 %v1776_v30, %v1573_v6  ;;  %v1580_v26 = vadd.f32 %v4641_v37, %v1198_v49  ;;  %v1196_v31 = vadd.f32 %v4651_v16, %v4604_v62  ;;  %v1201_v21 = vadd.f32 %v4655_v34, %v4606_v1 }
 0x168   : > { %4954 = vst [vmem:[#allocation25_spill] sm:$0xff] %v4705_v33  ;;  %v1823_v33 = vadd.f32 %v1760_v47, %v1569_v39  ;;  %v2028_v24 = vadd.f32 %v4667_v52, %v1826_v19  ;;  %v1830_v43 = vadd.f32 %v4679_v7, %v1576_v20  ;;  %v2031_v37 = vadd.f32 %v4671_v57, %v1829_v56  ;;  %v4958_v19 = vld [vmem:[#allocation18_spill] sm:$0xff] }
 0x169   : > { %v4711_v13 = vpop.f32.mrf.mxu1  ;;  %v4713_v29 = vpop.f32.mrf.mxu0  ;;  %v2029_v62 = vadd.f32 %v4673_v59, %v1827_v41  ;;  %v1828_v16 = vadd.f32 %v4683_v46, %v1574_v14  ;;  %v1578_v53 = vadd.f32 %v4956_v11, %v1196_v31  ;;  %v4963_v56 = vld [vmem:[#allocation20_spill] sm:$0xff] }
 0x16a   : > { %4955 = vst [vmem:[#allocation26_spill] sm:$0xff] %v4713_v29  ;;  %v2025_v40 = vadd.f32 %v1962_v4, %v1823_v33  ;;  %v1831_v41 = vadd.f32 %v4963_v56, %v1577_v8 }
 0x16b   : > { %v4717_v15 = vpop.f32.mrf.mxu1  ;;  %v3385_v18 = vpop.f32.mrf.mxu0  ;;  %v2030_v6 = vadd.f32 %v4961_v55, %v1828_v16 }
 0x16d   : > { %v4724_v54 = vpop.f32.mrf.mxu1  ;;  %v2598_v29 = vpop.f32.mrf.mxu0 }
 0x16f   : > { %v3367_v58 = vpop.f32.mrf.mxu1  ;;  %v3386_v0 = vpop.f32.mrf.mxu0  ;;  %v4971_v11 = vld [vmem:[#allocation25_spill] sm:$0xff] }
 0x170   : > { %v2409_v51 = vadd.f32 %v3367_v58, %v2027_v22  ;;  %v2032_v22 = vadd.f32 %v4957_v27, %v1830_v43 }
 0x171   : > { %v2344_v12 = vpop.f32.mrf.mxu1  ;;  %v2601_v9 = vpop.f32.mrf.mxu0 }
 0x172   : > { %v2663_v33 = vadd.f32 %v3385_v18, %v2409_v51  ;;  %v2407_v48 = vadd.f32 %v2344_v12, %v2025_v40 }
 0x173   : > { %v3368_v38 = vpop.f32.mrf.mxu1  ;;  %v3389_v4 = vpop.f32.mrf.mxu0 }
 0x174   : > { %v2686_v63 = vmul.f32 %v4742_v45, %v2663_v33  ;;  %v2661_v52 = vadd.f32 %v2598_v29, %v2407_v48  ;;  %v2410_v47 = vadd.f32 %v3368_v38, %v2028_v24  ;;  %v1199_v29 = vadd.f32 %v4659_v36, %v4610_v3  ;;  %v4962_v48 = vld [vmem:[#allocation16_spill] sm:$0xff]  ;;  %v4964_v38 = vld [vmem:[#allocation22_spill] sm:$0xff] }
 0x175   : > { %v2347_v10 = vpop.f32.mrf.mxu1  ;;  %v2614_v30 = vpop.f32.mrf.mxu0  ;;  %v1833_v3 = vadd.f32 %v4958_v19, %v1579_v23 }
 0x176   : > { %v2709_v60 = vadd.f32 %v4751_v17, %v2686_v63  ;;  %v2684_v39 = vmul.f32 %v4742_v45, %v2661_v52  ;;  %v2664_v28 = vadd.f32 %v3386_v0, %v2410_v47  ;;  %v2408_v18 = vadd.f32 %v2347_v10, %v2026_v5  ;;  %v4959_v0 = vld [vmem:[#allocation8_spill] sm:$0xff]  ;;  %v4965_v10 = vld [vmem:[#allocation5_spill] sm:$0xff] }
 0x177   : > { %v3371_v1 = vpop.f32.mrf.mxu1  ;;  %v3390_v34 = vpop.f32.mrf.mxu0  ;;  %v1583_v40 = vadd.f32 %v4959_v0, %v1201_v21  ;;  %v1581_v51 = vadd.f32 %v4960_v32, %v1199_v29  ;;  %v2035_v23 = vadd.f32 %v4962_v48, %v1833_v3  ;;  %v1834_v5 = vadd.f32 %v4964_v38, %v1580_v26 }
 0x178   : > { %v2725_v7 = vmax.f32 %v2709_v60, 0.0  ;;  %v2707_v42 = vadd.f32 %v4751_v17, %v2684_v39  ;;  %v2687_v61 = vmul.f32 %v4742_v45, %v2664_v28  ;;  %v2662_v2 = vadd.f32 %v2601_v9, %v2408_v18  ;;  %v4967_v39 = vld [vmem:[#allocation6_spill] sm:$0xff]  ;;  %v4968_v28 = vld [vmem:[#allocation13_spill] sm:$0xff] }
 0x179   : > { %v2413_v36 = vadd.f32 %v3371_v1, %v2031_v37  ;;  %v2360_v57 = vpop.f32.mrf.mxu1  ;;  %v2617_v44 = vpop.f32.mrf.mxu0  ;;  %v1200_v8 = vadd.f32 %v4968_v28, %v4967_v39  ;;  %v1832_v18 = vadd.f32 %v4700_v35, %v1578_v53  ;;  %v1837_v35 = vadd.f32 %v4971_v11, %v1583_v40 }
 0x17a   : > { %2742 = vst.msk [vmem:[%s4775_s13 + $0x10] sm:$0xff] %vm2739_vm8, %v2725_v7  ;;  %v2723_v46 = vmax.f32 %v2707_v42, 0.0  ;;  %v2710_v59 = vadd.f32 %v4751_v17, %v2687_v61  ;;  %v2685_v25 = vmul.f32 %v4742_v45, %v2662_v2  ;;  %v2411_v58 = vadd.f32 %v2360_v57, %v2029_v62  ;;  %v4969_v7 = vld [vmem:[#allocation17_spill] sm:$0xff]  ;;  %v4970_v61 = vld [vmem:[#allocation19_spill] sm:$0xff] }
 0x17b   : > { %v2667_v20 = vadd.f32 %v3389_v4, %v2413_v36  ;;  %v3372_v49 = vpop.f32.mrf.mxu1  ;;  %v3393_v12 = vpop.f32.mrf.mxu0  ;;  %v2033_v42 = vadd.f32 %v4969_v7, %v1831_v41  ;;  %v2036_v2 = vadd.f32 %v4970_v61, %v1834_v5  ;;  %v4976_v41 = vld [vmem:[#allocation24_spill] sm:$0xff] }
 0x17c   : > { %2740 = vst.msk [vmem:[%s4775_s13] sm:$0xff] %vm2739_vm8, %v2723_v46  ;;  %v2726_v9 = vmax.f32 %v2710_v59, 0.0  ;;  %v2708_v14 = vadd.f32 %v4751_v17, %v2685_v25  ;;  %v2665_v24 = vadd.f32 %v2614_v30, %v2411_v58  ;;  %v2414_v33 = vadd.f32 %v3372_v49, %v2032_v22  ;;  %v4966_v30 = vld [vmem:[#allocation12_spill] sm:$0xff]  ;;  %v4972_v46 = vld [vmem:[#allocation21_spill] sm:$0xff] }
 0x17d   : > { %v2690_v63 = vmul.f32 %v4742_v45, %v2667_v20  ;;  %v2363_v52 = vpop.f32.mrf.mxu1  ;;  %v2630_v4 = vpop.f32.mrf.mxu0  ;;  %v1202_v60 = vadd.f32 %v4966_v30, %v4965_v10  ;;  %v2034_v59 = vadd.f32 %v4972_v46, %v1832_v18  ;;  %v4973_v20 = vld [vmem:[#allocation10_spill] sm:$0xff] }
 0x17e   : > { %2743 = vst.msk [vmem:[%s4775_s13 + $0x18] sm:$0xff] %vm2739_vm8, %v2726_v9  ;;  %v2724_v47 = vmax.f32 %v2708_v14, 0.0  ;;  %v2688_v31 = vmul.f32 %v4742_v45, %v2665_v24  ;;  %v2668_v21 = vadd.f32 %v3390_v34, %v2414_v33  ;;  %v2412_v43 = vadd.f32 %v2363_v52, %v2030_v6  ;;  %v4975_v14 = vld [vmem:[#allocation23_spill] sm:$0xff]  ;;  %v4977_v18 = vld [vmem:[#allocation26_spill] sm:$0xff] }
 0x17f   : > { %v2713_v26 = vadd.f32 %v4751_v17, %v2690_v63  ;;  %v3375_v29 = vpop.f32.mrf.mxu1  ;;  %v3394_v37 = vpop.f32.mrf.mxu0  ;;  %v1584_v49 = vadd.f32 %v4973_v20, %v1202_v60 }
 0x180   : > { %2741 = vst.msk [vmem:[%s4775_s13 + $0x8] sm:$0xff] %vm2739_vm8, %v2724_v47  ;;  %v2711_v62 = vadd.f32 %v4751_v17, %v2688_v31  ;;  %v2691_v16 = vmul.f32 %v4742_v45, %v2668_v21  ;;  %v2666_v1 = vadd.f32 %v2617_v44, %v2412_v43  ;;  %v2417_v34 = vadd.f32 %v3375_v29, %v2035_v23 }
 0x181   : > { %v2729_v53 = vmax.f32 %v2713_v26, 0.0  ;;  %v2376_v27 = vpop.f32.mrf.mxu1  ;;  %v2633_v22 = vpop.f32.mrf.mxu0  ;;  %v1835_v44 = vadd.f32 %v4711_v13, %v1581_v51  ;;  %v2039_v13 = vadd.f32 %v4975_v14, %v1837_v35  ;;  %v1838_v5 = vadd.f32 %v4717_v15, %v1584_v49 }
 0x182   : > { %v2727_v19 = vmax.f32 %v2711_v62, 0.0  ;;  %v2714_v3 = vadd.f32 %v4751_v17, %v2691_v16  ;;  %v2689_v36 = vmul.f32 %v4742_v45, %v2666_v1  ;;  %v2671_v57 = vadd.f32 %v3393_v12, %v2417_v34  ;;  %v4974_v12 = vld [vmem:[#allocation11_spill] sm:$0xff] }
 0x183   : > { %2746 = vst.msk [vmem:[%s4775_s13 + $0x30] sm:$0xff] %vm2739_vm8, %v2729_v53  ;;  %v2415_v25 = vadd.f32 %v2376_v27, %v2033_v42  ;;  %v3376_v58 = vpop.f32.mrf.mxu1  ;;  %v3397_v0 = vpop.f32.mrf.mxu0  ;;  %v1582_v9 = vadd.f32 %v4974_v12, %v1200_v8  ;;  %v2037_v38 = vadd.f32 %v4976_v41, %v1835_v44  ;;  %v2040_v8 = vadd.f32 %v4707_v50, %v1838_v5 }
 0x184   : > { %2744 = vst.msk [vmem:[%s4775_s13 + $0x20] sm:$0xff] %vm2739_vm8, %v2727_v19  ;;  %v2730_v40 = vmax.f32 %v2714_v3, 0.0  ;;  %v2712_v32 = vadd.f32 %v4751_v17, %v2689_v36  ;;  %v2694_v55 = vmul.f32 %v4742_v45, %v2671_v57  ;;  %v2418_v6 = vadd.f32 %v3376_v58, %v2036_v2 }
 0x185   : > { %v2669_v51 = vadd.f32 %v2630_v4, %v2415_v25  ;;  %v2379_v24 = vpop.f32.mrf.mxu1  ;;  %v1836_v63 = vadd.f32 %v4724_v54, %v1582_v9  ;;  %v2646_v31 = vpop.f32.mrf.mxu0 }
 0x186   : > { %2747 = vst.msk [vmem:[%s4775_s13 + $0x38] sm:$0xff] %vm2739_vm8, %v2730_v40  ;;  %v2728_v33 = vmax.f32 %v2712_v32, 0.0  ;;  %v2717_v48 = vadd.f32 %v4751_v17, %v2694_v55  ;;  %v2672_v23 = vadd.f32 %v3394_v37, %v2418_v6  ;;  %v2416_v56 = vadd.f32 %v2379_v24, %v2034_v59 }
 0x187   : > { %v2692_v52 = vmul.f32 %v4742_v45, %v2669_v51  ;;  %v3379_v47 = vpop.f32.mrf.mxu1  ;;  %v2038_v26 = vadd.f32 %v4977_v18, %v1836_v63  ;;  %v3398_v62 = vpop.f32.mrf.mxu0 }
 0x188   : > { %2745 = vst.msk [vmem:[%s4775_s13 + $0x28] sm:$0xff] %vm2739_vm8, %v2728_v33  ;;  %v2733_v4 = vmax.f32 %v2717_v48, 0.0  ;;  %v2695_v21 = vmul.f32 %v4742_v45, %v2672_v23  ;;  %v2670_v43 = vadd.f32 %v2633_v22, %v2416_v56  ;;  %v2421_v10 = vadd.f32 %v3379_v47, %v2039_v13 }
 0x189   : > { %v2715_v30 = vadd.f32 %v4751_v17, %v2692_v52  ;;  %v2392_v60 = vpop.f32.mrf.mxu1  ;;  %v2649_v27 = vpop.f32.mrf.mxu0 }
 0x18a   : > { %2750 = vst.msk [vmem:[%s4775_s13 + $0x50] sm:$0xff] %vm2739_vm8, %v2733_v4  ;;  %v2718_v15 = vadd.f32 %v4751_v17, %v2695_v21  ;;  %v2693_v54 = vmul.f32 %v4742_v45, %v2670_v43  ;;  %v2675_v39 = vadd.f32 %v3397_v0, %v2421_v10  ;;  %v2419_v28 = vadd.f32 %v2392_v60, %v2037_v38 }
 0x18b   : > { %v2731_v29 = vmax.f32 %v2715_v30, 0.0  ;;  %v3380_v37 = vpop.f32.mrf.mxu1 }
 0x18c   : > { %v2734_v16 = vmax.f32 %v2718_v15, 0.0  ;;  %v2716_v1 = vadd.f32 %v4751_v17, %v2693_v54  ;;  %v2698_v34 = vmul.f32 %v4742_v45, %v2675_v39  ;;  %v2673_v7 = vadd.f32 %v2646_v31, %v2419_v28 }
 0x18d   : > { %2748 = vst.msk [vmem:[%s4775_s13 + $0x40] sm:$0xff] %vm2739_vm8, %v2731_v29  ;;  %v2422_v42 = vadd.f32 %v3380_v37, %v2040_v8  ;;  %v2395_v61 = vpop.f32.mrf.mxu1 }
 0x18e   : > { %2751 = vst.msk [vmem:[%s4775_s13 + $0x58] sm:$0xff] %vm2739_vm8, %v2734_v16  ;;  %v2732_v50 = vmax.f32 %v2716_v1, 0.0  ;;  %v2721_v2 = vadd.f32 %v4751_v17, %v2698_v34  ;;  %v2696_v11 = vmul.f32 %v4742_v45, %v2673_v7  ;;  %v2420_v35 = vadd.f32 %v2395_v61, %v2038_v26 }
 0x18f   : > { %v2676_v53 = vadd.f32 %v3398_v62, %v2422_v42 }
 0x190   : > { %2749 = vst.msk [vmem:[%s4775_s13 + $0x48] sm:$0xff] %vm2739_vm8, %v2732_v50  ;;  %v2737_v22 = vmax.f32 %v2721_v2, 0.0  ;;  %v2719_v19 = vadd.f32 %v4751_v17, %v2696_v11  ;;  %v2674_v3 = vadd.f32 %v2649_v27, %v2420_v35 }
 0x191   : > { %v2699_v36 = vmul.f32 %v4742_v45, %v2676_v53 }
 0x192   : > { %2754 = vst.msk [vmem:[%s4775_s13 + $0x70] sm:$0xff] %vm2739_vm8, %v2737_v22  ;;  %v2735_v57 = vmax.f32 %v2719_v19, 0.0  ;;  %v2697_v46 = vmul.f32 %v4742_v45, %v2674_v3 }
 0x193   : > { %v2722_v59 = vadd.f32 %v4751_v17, %v2699_v36 }
 0x194   : > { %2752 = vst.msk [vmem:[%s4775_s13 + $0x60] sm:$0xff] %vm2739_vm8, %v2735_v57  ;;  %v2720_v44 = vadd.f32 %v4751_v17, %v2697_v46 }
 0x195   : > { %v2738_v25 = vmax.f32 %v2722_v59, 0.0 }
 0x196   : > { %v2736_v45 = vmax.f32 %v2720_v44, 0.0 }
 0x197   : > { %2755 = vst.msk [vmem:[%s4775_s13 + $0x78] sm:$0xff] %vm2739_vm8, %v2738_v25 }
 0x198   : > { %2753 = vst.msk [vmem:[%s4775_s13 + $0x68] sm:$0xff] %vm2739_vm8, %v2736_v45 }
 0x199   : > { %3522 = shalt.err (!%p3519_p6)
}
 0x19a   : > { %s3523_s6 = scalar_lea.hbm %s4862_s5, 2048  ;;  %s3527_s23 = scalar_lea.hbm %s4927_s4, 8192 }
 0x19b   : > { %p3524_p7 = scmp.ne.s32.totalorder %s4862_s5, %s3523_s6  ;;  %p3528_p11 = scmp.lt.s32.totalorder %s4862_s5, %s4927_s4 }
 0x19c   : > { %p3529_p12 = scmp.lt.s32.totalorder %s3527_s23, %s3523_s6 }
 0x19d   : > { %p3525_p9 = pnand %p3524_p7, %p3682_p3 }
 0x19e   : > { %p3530_p13 = por %p3529_p12, %p3528_p11 }
 0x19f   : > { %p3526_p10 = pneg %p3525_p9 }
 0x1a1   : > { %p3531_p0 = pnand %p3530_p13, %p3526_p10 }
 0x1a3   : > { %3534 = shalt.err (!%p3531_p0)
}
 0x1a4   : > { %s3604_s27 = smov 128   ;;  %s3605_s30 = smov 8  }
 0x1a5   : > { %3412 = dma.vmem_to_hbm [thread:$0]  (%p3682_p3), %s4864_s19, 2048, %s4862_s5, %s4872_s8, %s3604_s27, %s3604_s27, %s3605_s30  }
 0x1a6 PF: > { %p3418_p1 = scmp.ge.s32.totalorder %s3601_s22, 2  ;;  %s2788_s9 = sand.u32 1, %s3573_s15  }
 0x1a7   : > { %s2789_s10 = scalar_lea.sflag [#allocation3], %s2788_s9 }
 0x1a8   : > { %p3415_p2 = pnand %p3418_p1, %p3691_p8 }
 0x1aa   : > { %p3416_p4 = pneg %p3415_p2 }
 0x1ac   : > { %3568 = dma.done.wait (%p3416_p4), %s2789_s10, 2048  }
 0x1ad   : > { %3570 = vsyncadd (%p3416_p4), %s2789_s10, 4294965248  ;;  %s17_s22 = sadd.s32 1, %s3601_s22   ;;  %s4978_s15 = smov %s3577_s16 }
 0x1ae   : > { %p14_p5 = scmp.ge.s32.totalorder %s17_s22, 6   ;;  %s4979_s16 = smov %s3581_s17 }
 0x1af   : > { %s4980_s17 = smov %s3700_s7  ;;  %s4981_s18 = smov %s3593_s20 }
 0x1b0   : > { %s4982_s19 = smov %s3597_s21  ;;  %s4983_s20 = smov %s4986_s25 }
 0x1b1   : > { %s4984_s21 = smov %s4990_s26  ;;  %16 = sbr.rel (!%p14_p5) target bundleno = 5 (0x5), region = 82 }
 0x1b6   :  { %2794 = vsyncpa [#allocation3], 1 }
 0x1b7   :  { %2796 = vsyncpa [#allocation3 + $0x1], 1 }

</bundles_post_ra>
